<compile_context>
chip_gen: v6e
topology: v6e:2x2x1
jax: 0.10.0
libtpu: 0.0.40
codegen_flags: <defaults>
</compile_context>

<pallas_src>
import functools

import jax
import jax.numpy as jnp
from jax import lax
from jax.experimental import pallas as pl
from jax.experimental.pallas import tpu as pltpu

# ----- physical constants (identical to the PyTorch module) -----
B11, B12, B21, B22 = 0.05, 0.025, 0.025, 0.05
K1, K2, L1, M2, D2 = 0.035, 0.045, 0.3, 1.0, 0.16
A1 = K1 + K2 + M2 * L1 ** 2      # 0.17
A2 = M2 * L1 * D2                # 0.048
A3 = K2                          # 0.045
DET0 = A3 * (A1 - A3)            # constant part of det

LANES = 128                      # vreg lane width
SUBLANES = 8                     # vreg sublane depth (f32)


def _arm_kernel(init_ref, ctrl_ref, out_ref, *, horizon, dt):
    # init_ref: VMEM (4, sub, 128) f32           -- initial states, (sublane, lane) = batch
    # ctrl_ref: VMEM (horizon, 2, sub, 128) f32  -- per-step controls, dense vreg planes
    # out_ref : VMEM (4, sub, 128) f32           -- final states

    x1 = init_ref[0]
    x2 = init_ref[1]
    x3 = init_ref[2]
    x4 = init_ref[3]

    def step(i, carry):
        x1, x2, x3, x4 = carry

        u = ctrl_ref[i]                       # (2, sub, 128) dense load
        u1 = u[0]
        u2 = u[1]

        c = jnp.cos(x2)
        s = jnp.sin(x2)
        a2c = A2 * c                          # CSE'd products
        a2s = A2 * s

        # 2x2 Minv(x2), expanded to scalar formulas
        det = DET0 - a2c * a2c
        off = -(A3 + a2c)                     # Minv_raw off-diagonal
        m22 = A1 + 2.0 * a2c                  # Minv_raw (2,2)

        # Coriolis terms C(x3, x4)
        c1 = -x4 * (2.0 * x3 + x4)
        c2 = x3 * x3

        # aux = control - a2*sin(x2)*C - B @ [x3, x4]
        aux1 = u1 - a2s * c1 - (B11 * x3 + B12 * x4)
        aux2 = u2 - a2s * c2 - (B21 * x3 + B22 * x4)

        inv = pl.reciprocal(det, approx=True)  # EUP push; det in [0.0033, 0.0056]
        inv = inv * (2.0 - det * inv)          # one Newton step -> ~exact f32 recip

        dx3 = (A3 * aux1 + off * aux2) * inv
        dx4 = (off * aux1 + m22 * aux2) * inv

        return (x1 + dt * x3, x2 + dt * x4, x3 + dt * dx3, x4 + dt * dx4)

    carry = (x1, x2, x3, x4)
    if horizon <= 16:
        # short static horizon: fully unroll for LLO scheduling visibility
        for i in range(horizon):
            carry = step(i, carry)
    else:
        # long-horizon: visible loop bounds live ranges (avoids vreg spills)
        carry = lax.fori_loop(0, horizon, step, carry, unroll=4)

    x1, x2, x3, x4 = carry
    out_ref[0] = x1                            # four full-vreg unmasked stores
    out_ref[1] = x2
    out_ref[2] = x3
    out_ref[3] = x4


def two_links_arm_dynamic_batched(initial_states, controls, time_simulation,
                                  *, sublanes_per_tile=SUBLANES):
    """Batched rollouts.

    initial_states: (B, 4)          controls: (B, horizon, 2)
    returns:        (B, 4) final states
    """
    bsz = initial_states.shape[0]
    horizon = controls.shape[1]
    dt = float(time_simulation) / horizon

    tile = sublanes_per_tile * LANES                     # rollouts per grid step
    n_tiles = max(1, -(-bsz // tile))
    padded = n_tiles * tile
    n_rows = padded // LANES                             # total sublane rows

    init = initial_states.astype(jnp.float32)
    ctrl = controls.astype(jnp.float32)
    if padded != bsz:                                    # pad only when needed
        init = jnp.pad(init, ((0, padded - bsz), (0, 0)))
        ctrl = jnp.pad(ctrl, ((0, padded - bsz), (0, 0), (0, 0)))

    # (sublane, lane)-major layouts: batch element i -> (row i//128, lane i%128)
    init = init.T.reshape(4, n_rows, LANES)                              # (4, rows, 128)
    ctrl = jnp.transpose(ctrl, (1, 2, 0)).reshape(horizon, 2, n_rows, LANES)

    kernel = functools.partial(_arm_kernel, horizon=horizon, dt=dt)

    out = pl.pallas_call(
        kernel,
        out_shape=jax.ShapeDtypeStruct((4, n_rows, LANES), jnp.float32),
        grid=(n_tiles,),
        in_specs=[
            pl.BlockSpec((4, sublanes_per_tile, LANES), lambda b: (0, b, 0)),
            pl.BlockSpec((horizon, 2, sublanes_per_tile, LANES),
                         lambda b: (0, 0, b, 0)),
        ],
        out_specs=pl.BlockSpec((4, sublanes_per_tile, LANES), lambda b: (0, b, 0)),
        compiler_params=pltpu.CompilerParams(
            dimension_semantics=("parallel",)),
    )(init, ctrl)

    out = out.reshape(4, padded).T
    return out[:bsz]


def two_links_arm_dynamic(initial_state, controls, time_simulation):
    """Module-equivalent single rollout (initial_state (4,), controls (horizon, 2))."""
    out = two_links_arm_dynamic_batched(initial_state[None], controls[None],
                                        time_simulation)
    return out[0]


def _ref_forward_single(x0, controls, time_simulation):
    """Pure-JAX reference mirroring the PyTorch forward (f32)."""
    horizon = controls.shape[0]
    dt = time_simulation / horizon
    Bmat = jnp.array([[B11, B12], [B21, B22]], jnp.float32)
    x = x0.astype(jnp.float32)
    for t in range(horizon):
        u = controls[t].astype(jnp.float32)
        cosx2 = jnp.cos(x[1])
        sinx2 = jnp.sin(x[1])
        m11 = jnp.float32(A3)
        m12 = -(A3 + A2 * cosx2)
        m22 = A1 + 2.0 * A2 * cosx2
        minv_raw = jnp.stack((jnp.stack((m11, m12)), jnp.stack((m12, m22))))
        minv = minv_raw / (A3 * (A1 - A3) - A2 ** 2 * cosx2 ** 2)
        cvec = jnp.stack((-x[3] * (2.0 * x[2] + x[3]), x[2] ** 2))
        x1x2 = x[0:2] + dt * x[2:4]
        aux = u - A2 * sinx2 * cvec - Bmat @ x[2:4]
        x3x4 = x[2:4] + dt * (minv @ aux)
        x = jnp.concatenate((x1x2, x3x4))
    return x


def _ref_forward_batched(x0s, controls, time_simulation):
    return jax.vmap(lambda x0, c: _ref_forward_single(x0, c, time_simulation))(
        x0s, controls)


if __name__ == "__main__":
    key = jax.random.PRNGKey(0)
    k_state, k_ctrl = jax.random.split(key)

    horizon = 8
    time_simulation = 1.0
    batch = 1200     # pads to 2048 -> two 1024-rollout tiles (exercises parallel grid + padding)

    # Modest controls keep the stiff discretized dynamics well-conditioned so the
    # f32 rollout tracks the exact-f32 reference closely.
    initial_states = 0.1 * jax.random.normal(k_state, (batch, 4), dtype=jnp.float32)
    controls = 0.05 * jax.random.uniform(k_ctrl, (batch, horizon, 2), dtype=jnp.float32)

    # batched rollouts through the Pallas kernel
    out_b = two_links_arm_dynamic_batched(initial_states, controls, time_simulation)
    out_b = jax.block_until_ready(out_b)

    ref_b = _ref_forward_batched(initial_states, controls, time_simulation)
    assert out_b.shape == (batch, 4)
    assert bool(jnp.all(jnp.isfinite(out_b)))
    # approx reciprocal + one Newton step is ~f32-exact; only op-ordering noise remains
    assert jnp.allclose(out_b, ref_b, rtol=1e-3, atol=1e-4), (out_b[:2], ref_b[:2])

    # module-equivalent single rollout
    out1 = two_links_arm_dynamic(initial_states[0], controls[0], time_simulation)
    out1 = jax.block_until_ready(out1)
    assert out1.shape == (4,)
    assert jnp.allclose(out1, ref_b[0], rtol=1e-3, atol=1e-4), (out1, ref_b[0])

    print("KERNEL_OK")
</pallas_src>

<mosaic_0001>
module attributes {stable_mosaic.version = 11 : i64} {
  func.func @_arm_kernel(%arg0: i32, %arg1: memref<4x8x128xf32, #tpu.memory_space<vmem>>, %arg2: memref<8x2x8x128xf32, #tpu.memory_space<vmem>>, %arg3: memref<4x8x128xf32, #tpu.memory_space<vmem>>) attributes {dimension_semantics = [#tpu.dimension_semantics<parallel>], iteration_bounds = array<i64: 2>, scalar_prefetch = 0 : i64, scratch_operands = 0 : i64, tpu.core_type = #tpu.core_type<tc>, window_params = [{transform_indices = @transform_0, window_bounds = array<i64: 4, 8, 128>}, {transform_indices = @transform_1, window_bounds = array<i64: 8, 2, 8, 128>}, {transform_indices = @transform_2, window_bounds = array<i64: 4, 8, 128>}]} {
    %c0 = arith.constant 0 : index
    %c0_0 = arith.constant 0 : index
    %c0_1 = arith.constant 0 : index
    %0 = vector.load %arg1[%c0, %c0_0, %c0_1] : memref<4x8x128xf32, #tpu.memory_space<vmem>>, vector<1x8x128xf32>
    %1 = vector.shape_cast %0 : vector<1x8x128xf32> to vector<8x128xf32>
    %c1 = arith.constant 1 : index
    %c0_2 = arith.constant 0 : index
    %c0_3 = arith.constant 0 : index
    %2 = vector.load %arg1[%c1, %c0_2, %c0_3] : memref<4x8x128xf32, #tpu.memory_space<vmem>>, vector<1x8x128xf32>
    %3 = vector.shape_cast %2 : vector<1x8x128xf32> to vector<8x128xf32>
    %c2 = arith.constant 2 : index
    %c0_4 = arith.constant 0 : index
    %c0_5 = arith.constant 0 : index
    %4 = vector.load %arg1[%c2, %c0_4, %c0_5] : memref<4x8x128xf32, #tpu.memory_space<vmem>>, vector<1x8x128xf32>
    %5 = vector.shape_cast %4 : vector<1x8x128xf32> to vector<8x128xf32>
    %c3 = arith.constant 3 : index
    %c0_6 = arith.constant 0 : index
    %c0_7 = arith.constant 0 : index
    %6 = vector.load %arg1[%c3, %c0_6, %c0_7] : memref<4x8x128xf32, #tpu.memory_space<vmem>>, vector<1x8x128xf32>
    %7 = vector.shape_cast %6 : vector<1x8x128xf32> to vector<8x128xf32>
    %c0_8 = arith.constant 0 : index
    %c0_9 = arith.constant 0 : index
    %c0_10 = arith.constant 0 : index
    %c0_11 = arith.constant 0 : index
    %8 = vector.load %arg2[%c0_8, %c0_9, %c0_10, %c0_11] : memref<8x2x8x128xf32, #tpu.memory_space<vmem>>, vector<1x2x8x128xf32>
    %9 = vector.shape_cast %8 : vector<1x2x8x128xf32> to vector<2x8x128xf32>
    %10 = vector.extract_strided_slice %9 {offsets = [0, 0, 0], sizes = [1, 8, 128], strides = [1, 1, 1]} : vector<2x8x128xf32> to vector<1x8x128xf32>
    %11 = vector.shape_cast %10 : vector<1x8x128xf32> to vector<8x128xf32>
    %12 = vector.extract_strided_slice %9 {offsets = [1, 0, 0], sizes = [1, 8, 128], strides = [1, 1, 1]} : vector<2x8x128xf32> to vector<1x8x128xf32>
    %13 = vector.shape_cast %12 : vector<1x8x128xf32> to vector<8x128xf32>
    %14 = math.cos %3 : vector<8x128xf32>
    %15 = math.sin %3 : vector<8x128xf32>
    %cst = arith.constant 4.800000e-02 : f32
    %16 = vector.broadcast %cst : f32 to vector<8x128xf32>
    %17 = arith.mulf %16, %14 : vector<8x128xf32>
    %cst_12 = arith.constant 4.800000e-02 : f32
    %18 = vector.broadcast %cst_12 : f32 to vector<8x128xf32>
    %19 = arith.mulf %18, %15 : vector<8x128xf32>
    %20 = arith.mulf %17, %17 : vector<8x128xf32>
    %cst_13 = arith.constant 5.625000e-03 : f32
    %21 = vector.broadcast %cst_13 : f32 to vector<8x128xf32>
    %22 = arith.subf %21, %20 : vector<8x128xf32>
    %cst_14 = arith.constant 4.500000e-02 : f32
    %23 = vector.broadcast %cst_14 : f32 to vector<8x128xf32>
    %24 = arith.addf %23, %17 : vector<8x128xf32>
    %cst_15 = arith.constant 0.000000e+00 : f32
    %25 = vector.broadcast %cst_15 : f32 to vector<8x128xf32>
    %26 = arith.subf %25, %24 : vector<8x128xf32>
    %cst_16 = arith.constant 2.000000e+00 : f32
    %27 = vector.broadcast %cst_16 : f32 to vector<8x128xf32>
    %28 = arith.mulf %27, %17 : vector<8x128xf32>
    %cst_17 = arith.constant 1.700000e-01 : f32
    %29 = vector.broadcast %cst_17 : f32 to vector<8x128xf32>
    %30 = arith.addf %29, %28 : vector<8x128xf32>
    %cst_18 = arith.constant 0.000000e+00 : f32
    %31 = vector.broadcast %cst_18 : f32 to vector<8x128xf32>
    %32 = arith.subf %31, %7 : vector<8x128xf32>
    %cst_19 = arith.constant 2.000000e+00 : f32
    %33 = vector.broadcast %cst_19 : f32 to vector<8x128xf32>
    %34 = arith.mulf %33, %5 : vector<8x128xf32>
    %35 = arith.addf %34, %7 : vector<8x128xf32>
    %36 = arith.mulf %32, %35 : vector<8x128xf32>
    %37 = arith.mulf %5, %5 : vector<8x128xf32>
    %38 = arith.mulf %19, %36 : vector<8x128xf32>
    %39 = arith.subf %11, %38 : vector<8x128xf32>
    %cst_20 = arith.constant 5.000000e-02 : f32
    %40 = vector.broadcast %cst_20 : f32 to vector<8x128xf32>
    %41 = arith.mulf %40, %5 : vector<8x128xf32>
    %cst_21 = arith.constant 2.500000e-02 : f32
    %42 = vector.broadcast %cst_21 : f32 to vector<8x128xf32>
    %43 = arith.mulf %42, %7 : vector<8x128xf32>
    %44 = arith.addf %41, %43 : vector<8x128xf32>
    %45 = arith.subf %39, %44 : vector<8x128xf32>
    %46 = arith.mulf %19, %37 : vector<8x128xf32>
    %47 = arith.subf %13, %46 : vector<8x128xf32>
    %cst_22 = arith.constant 2.500000e-02 : f32
    %48 = vector.broadcast %cst_22 : f32 to vector<8x128xf32>
    %49 = arith.mulf %48, %5 : vector<8x128xf32>
    %cst_23 = arith.constant 5.000000e-02 : f32
    %50 = vector.broadcast %cst_23 : f32 to vector<8x128xf32>
    %51 = arith.mulf %50, %7 : vector<8x128xf32>
    %52 = arith.addf %49, %51 : vector<8x128xf32>
    %53 = arith.subf %47, %52 : vector<8x128xf32>
    %54 = tpu.reciprocal %22 {approx = true} : vector<8x128xf32> -> vector<8x128xf32>
    %55 = arith.mulf %22, %54 : vector<8x128xf32>
    %cst_24 = arith.constant 2.000000e+00 : f32
    %56 = vector.broadcast %cst_24 : f32 to vector<8x128xf32>
    %57 = arith.subf %56, %55 : vector<8x128xf32>
    %58 = arith.mulf %54, %57 : vector<8x128xf32>
    %cst_25 = arith.constant 4.500000e-02 : f32
    %59 = vector.broadcast %cst_25 : f32 to vector<8x128xf32>
    %60 = arith.mulf %59, %45 : vector<8x128xf32>
    %61 = arith.mulf %26, %53 : vector<8x128xf32>
    %62 = arith.addf %60, %61 : vector<8x128xf32>
    %63 = arith.mulf %62, %58 : vector<8x128xf32>
    %64 = arith.mulf %26, %45 : vector<8x128xf32>
    %65 = arith.mulf %30, %53 : vector<8x128xf32>
    %66 = arith.addf %64, %65 : vector<8x128xf32>
    %67 = arith.mulf %66, %58 : vector<8x128xf32>
    %cst_26 = arith.constant 1.250000e-01 : f32
    %68 = vector.broadcast %cst_26 : f32 to vector<8x128xf32>
    %69 = arith.mulf %68, %5 : vector<8x128xf32>
    %70 = arith.addf %1, %69 : vector<8x128xf32>
    %cst_27 = arith.constant 1.250000e-01 : f32
    %71 = vector.broadcast %cst_27 : f32 to vector<8x128xf32>
    %72 = arith.mulf %71, %7 : vector<8x128xf32>
    %73 = arith.addf %3, %72 : vector<8x128xf32>
    %cst_28 = arith.constant 1.250000e-01 : f32
    %74 = vector.broadcast %cst_28 : f32 to vector<8x128xf32>
    %75 = arith.mulf %74, %63 : vector<8x128xf32>
    %76 = arith.addf %5, %75 : vector<8x128xf32>
    %cst_29 = arith.constant 1.250000e-01 : f32
    %77 = vector.broadcast %cst_29 : f32 to vector<8x128xf32>
    %78 = arith.mulf %77, %67 : vector<8x128xf32>
    %79 = arith.addf %7, %78 : vector<8x128xf32>
    %c1_30 = arith.constant 1 : index
    %c0_31 = arith.constant 0 : index
    %c0_32 = arith.constant 0 : index
    %c0_33 = arith.constant 0 : index
    %80 = vector.load %arg2[%c1_30, %c0_31, %c0_32, %c0_33] : memref<8x2x8x128xf32, #tpu.memory_space<vmem>>, vector<1x2x8x128xf32>
    %81 = vector.shape_cast %80 : vector<1x2x8x128xf32> to vector<2x8x128xf32>
    %82 = vector.extract_strided_slice %81 {offsets = [0, 0, 0], sizes = [1, 8, 128], strides = [1, 1, 1]} : vector<2x8x128xf32> to vector<1x8x128xf32>
    %83 = vector.shape_cast %82 : vector<1x8x128xf32> to vector<8x128xf32>
    %84 = vector.extract_strided_slice %81 {offsets = [1, 0, 0], sizes = [1, 8, 128], strides = [1, 1, 1]} : vector<2x8x128xf32> to vector<1x8x128xf32>
    %85 = vector.shape_cast %84 : vector<1x8x128xf32> to vector<8x128xf32>
    %86 = math.cos %73 : vector<8x128xf32>
    %87 = math.sin %73 : vector<8x128xf32>
    %cst_34 = arith.constant 4.800000e-02 : f32
    %88 = vector.broadcast %cst_34 : f32 to vector<8x128xf32>
    %89 = arith.mulf %88, %86 : vector<8x128xf32>
    %cst_35 = arith.constant 4.800000e-02 : f32
    %90 = vector.broadcast %cst_35 : f32 to vector<8x128xf32>
    %91 = arith.mulf %90, %87 : vector<8x128xf32>
    %92 = arith.mulf %89, %89 : vector<8x128xf32>
    %cst_36 = arith.constant 5.625000e-03 : f32
    %93 = vector.broadcast %cst_36 : f32 to vector<8x128xf32>
    %94 = arith.subf %93, %92 : vector<8x128xf32>
    %cst_37 = arith.constant 4.500000e-02 : f32
    %95 = vector.broadcast %cst_37 : f32 to vector<8x128xf32>
    %96 = arith.addf %95, %89 : vector<8x128xf32>
    %cst_38 = arith.constant 0.000000e+00 : f32
    %97 = vector.broadcast %cst_38 : f32 to vector<8x128xf32>
    %98 = arith.subf %97, %96 : vector<8x128xf32>
    %cst_39 = arith.constant 2.000000e+00 : f32
    %99 = vector.broadcast %cst_39 : f32 to vector<8x128xf32>
    %100 = arith.mulf %99, %89 : vector<8x128xf32>
    %cst_40 = arith.constant 1.700000e-01 : f32
    %101 = vector.broadcast %cst_40 : f32 to vector<8x128xf32>
    %102 = arith.addf %101, %100 : vector<8x128xf32>
    %cst_41 = arith.constant 0.000000e+00 : f32
    %103 = vector.broadcast %cst_41 : f32 to vector<8x128xf32>
    %104 = arith.subf %103, %79 : vector<8x128xf32>
    %cst_42 = arith.constant 2.000000e+00 : f32
    %105 = vector.broadcast %cst_42 : f32 to vector<8x128xf32>
    %106 = arith.mulf %105, %76 : vector<8x128xf32>
    %107 = arith.addf %106, %79 : vector<8x128xf32>
    %108 = arith.mulf %104, %107 : vector<8x128xf32>
    %109 = arith.mulf %76, %76 : vector<8x128xf32>
    %110 = arith.mulf %91, %108 : vector<8x128xf32>
    %111 = arith.subf %83, %110 : vector<8x128xf32>
    %cst_43 = arith.constant 5.000000e-02 : f32
    %112 = vector.broadcast %cst_43 : f32 to vector<8x128xf32>
    %113 = arith.mulf %112, %76 : vector<8x128xf32>
    %cst_44 = arith.constant 2.500000e-02 : f32
    %114 = vector.broadcast %cst_44 : f32 to vector<8x128xf32>
    %115 = arith.mulf %114, %79 : vector<8x128xf32>
    %116 = arith.addf %113, %115 : vector<8x128xf32>
    %117 = arith.subf %111, %116 : vector<8x128xf32>
    %118 = arith.mulf %91, %109 : vector<8x128xf32>
    %119 = arith.subf %85, %118 : vector<8x128xf32>
    %cst_45 = arith.constant 2.500000e-02 : f32
    %120 = vector.broadcast %cst_45 : f32 to vector<8x128xf32>
    %121 = arith.mulf %120, %76 : vector<8x128xf32>
    %cst_46 = arith.constant 5.000000e-02 : f32
    %122 = vector.broadcast %cst_46 : f32 to vector<8x128xf32>
    %123 = arith.mulf %122, %79 : vector<8x128xf32>
    %124 = arith.addf %121, %123 : vector<8x128xf32>
    %125 = arith.subf %119, %124 : vector<8x128xf32>
    %126 = tpu.reciprocal %94 {approx = true} : vector<8x128xf32> -> vector<8x128xf32>
    %127 = arith.mulf %94, %126 : vector<8x128xf32>
    %cst_47 = arith.constant 2.000000e+00 : f32
    %128 = vector.broadcast %cst_47 : f32 to vector<8x128xf32>
    %129 = arith.subf %128, %127 : vector<8x128xf32>
    %130 = arith.mulf %126, %129 : vector<8x128xf32>
    %cst_48 = arith.constant 4.500000e-02 : f32
    %131 = vector.broadcast %cst_48 : f32 to vector<8x128xf32>
    %132 = arith.mulf %131, %117 : vector<8x128xf32>
    %133 = arith.mulf %98, %125 : vector<8x128xf32>
    %134 = arith.addf %132, %133 : vector<8x128xf32>
    %135 = arith.mulf %134, %130 : vector<8x128xf32>
    %136 = arith.mulf %98, %117 : vector<8x128xf32>
    %137 = arith.mulf %102, %125 : vector<8x128xf32>
    %138 = arith.addf %136, %137 : vector<8x128xf32>
    %139 = arith.mulf %138, %130 : vector<8x128xf32>
    %cst_49 = arith.constant 1.250000e-01 : f32
    %140 = vector.broadcast %cst_49 : f32 to vector<8x128xf32>
    %141 = arith.mulf %140, %76 : vector<8x128xf32>
    %142 = arith.addf %70, %141 : vector<8x128xf32>
    %cst_50 = arith.constant 1.250000e-01 : f32
    %143 = vector.broadcast %cst_50 : f32 to vector<8x128xf32>
    %144 = arith.mulf %143, %79 : vector<8x128xf32>
    %145 = arith.addf %73, %144 : vector<8x128xf32>
    %cst_51 = arith.constant 1.250000e-01 : f32
    %146 = vector.broadcast %cst_51 : f32 to vector<8x128xf32>
    %147 = arith.mulf %146, %135 : vector<8x128xf32>
    %148 = arith.addf %76, %147 : vector<8x128xf32>
    %cst_52 = arith.constant 1.250000e-01 : f32
    %149 = vector.broadcast %cst_52 : f32 to vector<8x128xf32>
    %150 = arith.mulf %149, %139 : vector<8x128xf32>
    %151 = arith.addf %79, %150 : vector<8x128xf32>
    %c2_53 = arith.constant 2 : index
    %c0_54 = arith.constant 0 : index
    %c0_55 = arith.constant 0 : index
    %c0_56 = arith.constant 0 : index
    %152 = vector.load %arg2[%c2_53, %c0_54, %c0_55, %c0_56] : memref<8x2x8x128xf32, #tpu.memory_space<vmem>>, vector<1x2x8x128xf32>
    %153 = vector.shape_cast %152 : vector<1x2x8x128xf32> to vector<2x8x128xf32>
    %154 = vector.extract_strided_slice %153 {offsets = [0, 0, 0], sizes = [1, 8, 128], strides = [1, 1, 1]} : vector<2x8x128xf32> to vector<1x8x128xf32>
    %155 = vector.shape_cast %154 : vector<1x8x128xf32> to vector<8x128xf32>
    %156 = vector.extract_strided_slice %153 {offsets = [1, 0, 0], sizes = [1, 8, 128], strides = [1, 1, 1]} : vector<2x8x128xf32> to vector<1x8x128xf32>
    %157 = vector.shape_cast %156 : vector<1x8x128xf32> to vector<8x128xf32>
    %158 = math.cos %145 : vector<8x128xf32>
    %159 = math.sin %145 : vector<8x128xf32>
    %cst_57 = arith.constant 4.800000e-02 : f32
    %160 = vector.broadcast %cst_57 : f32 to vector<8x128xf32>
    %161 = arith.mulf %160, %158 : vector<8x128xf32>
    %cst_58 = arith.constant 4.800000e-02 : f32
    %162 = vector.broadcast %cst_58 : f32 to vector<8x128xf32>
    %163 = arith.mulf %162, %159 : vector<8x128xf32>
    %164 = arith.mulf %161, %161 : vector<8x128xf32>
    %cst_59 = arith.constant 5.625000e-03 : f32
    %165 = vector.broadcast %cst_59 : f32 to vector<8x128xf32>
    %166 = arith.subf %165, %164 : vector<8x128xf32>
    %cst_60 = arith.constant 4.500000e-02 : f32
    %167 = vector.broadcast %cst_60 : f32 to vector<8x128xf32>
    %168 = arith.addf %167, %161 : vector<8x128xf32>
    %cst_61 = arith.constant 0.000000e+00 : f32
    %169 = vector.broadcast %cst_61 : f32 to vector<8x128xf32>
    %170 = arith.subf %169, %168 : vector<8x128xf32>
    %cst_62 = arith.constant 2.000000e+00 : f32
    %171 = vector.broadcast %cst_62 : f32 to vector<8x128xf32>
    %172 = arith.mulf %171, %161 : vector<8x128xf32>
    %cst_63 = arith.constant 1.700000e-01 : f32
    %173 = vector.broadcast %cst_63 : f32 to vector<8x128xf32>
    %174 = arith.addf %173, %172 : vector<8x128xf32>
    %cst_64 = arith.constant 0.000000e+00 : f32
    %175 = vector.broadcast %cst_64 : f32 to vector<8x128xf32>
    %176 = arith.subf %175, %151 : vector<8x128xf32>
    %cst_65 = arith.constant 2.000000e+00 : f32
    %177 = vector.broadcast %cst_65 : f32 to vector<8x128xf32>
    %178 = arith.mulf %177, %148 : vector<8x128xf32>
    %179 = arith.addf %178, %151 : vector<8x128xf32>
    %180 = arith.mulf %176, %179 : vector<8x128xf32>
    %181 = arith.mulf %148, %148 : vector<8x128xf32>
    %182 = arith.mulf %163, %180 : vector<8x128xf32>
    %183 = arith.subf %155, %182 : vector<8x128xf32>
    %cst_66 = arith.constant 5.000000e-02 : f32
    %184 = vector.broadcast %cst_66 : f32 to vector<8x128xf32>
    %185 = arith.mulf %184, %148 : vector<8x128xf32>
    %cst_67 = arith.constant 2.500000e-02 : f32
    %186 = vector.broadcast %cst_67 : f32 to vector<8x128xf32>
    %187 = arith.mulf %186, %151 : vector<8x128xf32>
    %188 = arith.addf %185, %187 : vector<8x128xf32>
    %189 = arith.subf %183, %188 : vector<8x128xf32>
    %190 = arith.mulf %163, %181 : vector<8x128xf32>
    %191 = arith.subf %157, %190 : vector<8x128xf32>
    %cst_68 = arith.constant 2.500000e-02 : f32
    %192 = vector.broadcast %cst_68 : f32 to vector<8x128xf32>
    %193 = arith.mulf %192, %148 : vector<8x128xf32>
    %cst_69 = arith.constant 5.000000e-02 : f32
    %194 = vector.broadcast %cst_69 : f32 to vector<8x128xf32>
    %195 = arith.mulf %194, %151 : vector<8x128xf32>
    %196 = arith.addf %193, %195 : vector<8x128xf32>
    %197 = arith.subf %191, %196 : vector<8x128xf32>
    %198 = tpu.reciprocal %166 {approx = true} : vector<8x128xf32> -> vector<8x128xf32>
    %199 = arith.mulf %166, %198 : vector<8x128xf32>
    %cst_70 = arith.constant 2.000000e+00 : f32
    %200 = vector.broadcast %cst_70 : f32 to vector<8x128xf32>
    %201 = arith.subf %200, %199 : vector<8x128xf32>
    %202 = arith.mulf %198, %201 : vector<8x128xf32>
    %cst_71 = arith.constant 4.500000e-02 : f32
    %203 = vector.broadcast %cst_71 : f32 to vector<8x128xf32>
    %204 = arith.mulf %203, %189 : vector<8x128xf32>
    %205 = arith.mulf %170, %197 : vector<8x128xf32>
    %206 = arith.addf %204, %205 : vector<8x128xf32>
    %207 = arith.mulf %206, %202 : vector<8x128xf32>
    %208 = arith.mulf %170, %189 : vector<8x128xf32>
    %209 = arith.mulf %174, %197 : vector<8x128xf32>
    %210 = arith.addf %208, %209 : vector<8x128xf32>
    %211 = arith.mulf %210, %202 : vector<8x128xf32>
    %cst_72 = arith.constant 1.250000e-01 : f32
    %212 = vector.broadcast %cst_72 : f32 to vector<8x128xf32>
    %213 = arith.mulf %212, %148 : vector<8x128xf32>
    %214 = arith.addf %142, %213 : vector<8x128xf32>
    %cst_73 = arith.constant 1.250000e-01 : f32
    %215 = vector.broadcast %cst_73 : f32 to vector<8x128xf32>
    %216 = arith.mulf %215, %151 : vector<8x128xf32>
    %217 = arith.addf %145, %216 : vector<8x128xf32>
    %cst_74 = arith.constant 1.250000e-01 : f32
    %218 = vector.broadcast %cst_74 : f32 to vector<8x128xf32>
    %219 = arith.mulf %218, %207 : vector<8x128xf32>
    %220 = arith.addf %148, %219 : vector<8x128xf32>
    %cst_75 = arith.constant 1.250000e-01 : f32
    %221 = vector.broadcast %cst_75 : f32 to vector<8x128xf32>
    %222 = arith.mulf %221, %211 : vector<8x128xf32>
    %223 = arith.addf %151, %222 : vector<8x128xf32>
    %c3_76 = arith.constant 3 : index
    %c0_77 = arith.constant 0 : index
    %c0_78 = arith.constant 0 : index
    %c0_79 = arith.constant 0 : index
    %224 = vector.load %arg2[%c3_76, %c0_77, %c0_78, %c0_79] : memref<8x2x8x128xf32, #tpu.memory_space<vmem>>, vector<1x2x8x128xf32>
    %225 = vector.shape_cast %224 : vector<1x2x8x128xf32> to vector<2x8x128xf32>
    %226 = vector.extract_strided_slice %225 {offsets = [0, 0, 0], sizes = [1, 8, 128], strides = [1, 1, 1]} : vector<2x8x128xf32> to vector<1x8x128xf32>
    %227 = vector.shape_cast %226 : vector<1x8x128xf32> to vector<8x128xf32>
    %228 = vector.extract_strided_slice %225 {offsets = [1, 0, 0], sizes = [1, 8, 128], strides = [1, 1, 1]} : vector<2x8x128xf32> to vector<1x8x128xf32>
    %229 = vector.shape_cast %228 : vector<1x8x128xf32> to vector<8x128xf32>
    %230 = math.cos %217 : vector<8x128xf32>
    %231 = math.sin %217 : vector<8x128xf32>
    %cst_80 = arith.constant 4.800000e-02 : f32
    %232 = vector.broadcast %cst_80 : f32 to vector<8x128xf32>
    %233 = arith.mulf %232, %230 : vector<8x128xf32>
    %cst_81 = arith.constant 4.800000e-02 : f32
    %234 = vector.broadcast %cst_81 : f32 to vector<8x128xf32>
    %235 = arith.mulf %234, %231 : vector<8x128xf32>
    %236 = arith.mulf %233, %233 : vector<8x128xf32>
    %cst_82 = arith.constant 5.625000e-03 : f32
    %237 = vector.broadcast %cst_82 : f32 to vector<8x128xf32>
    %238 = arith.subf %237, %236 : vector<8x128xf32>
    %cst_83 = arith.constant 4.500000e-02 : f32
    %239 = vector.broadcast %cst_83 : f32 to vector<8x128xf32>
    %240 = arith.addf %239, %233 : vector<8x128xf32>
    %cst_84 = arith.constant 0.000000e+00 : f32
    %241 = vector.broadcast %cst_84 : f32 to vector<8x128xf32>
    %242 = arith.subf %241, %240 : vector<8x128xf32>
    %cst_85 = arith.constant 2.000000e+00 : f32
    %243 = vector.broadcast %cst_85 : f32 to vector<8x128xf32>
    %244 = arith.mulf %243, %233 : vector<8x128xf32>
    %cst_86 = arith.constant 1.700000e-01 : f32
    %245 = vector.broadcast %cst_86 : f32 to vector<8x128xf32>
    %246 = arith.addf %245, %244 : vector<8x128xf32>
    %cst_87 = arith.constant 0.000000e+00 : f32
    %247 = vector.broadcast %cst_87 : f32 to vector<8x128xf32>
    %248 = arith.subf %247, %223 : vector<8x128xf32>
    %cst_88 = arith.constant 2.000000e+00 : f32
    %249 = vector.broadcast %cst_88 : f32 to vector<8x128xf32>
    %250 = arith.mulf %249, %220 : vector<8x128xf32>
    %251 = arith.addf %250, %223 : vector<8x128xf32>
    %252 = arith.mulf %248, %251 : vector<8x128xf32>
    %253 = arith.mulf %220, %220 : vector<8x128xf32>
    %254 = arith.mulf %235, %252 : vector<8x128xf32>
    %255 = arith.subf %227, %254 : vector<8x128xf32>
    %cst_89 = arith.constant 5.000000e-02 : f32
    %256 = vector.broadcast %cst_89 : f32 to vector<8x128xf32>
    %257 = arith.mulf %256, %220 : vector<8x128xf32>
    %cst_90 = arith.constant 2.500000e-02 : f32
    %258 = vector.broadcast %cst_90 : f32 to vector<8x128xf32>
    %259 = arith.mulf %258, %223 : vector<8x128xf32>
    %260 = arith.addf %257, %259 : vector<8x128xf32>
    %261 = arith.subf %255, %260 : vector<8x128xf32>
    %262 = arith.mulf %235, %253 : vector<8x128xf32>
    %263 = arith.subf %229, %262 : vector<8x128xf32>
    %cst_91 = arith.constant 2.500000e-02 : f32
    %264 = vector.broadcast %cst_91 : f32 to vector<8x128xf32>
    %265 = arith.mulf %264, %220 : vector<8x128xf32>
    %cst_92 = arith.constant 5.000000e-02 : f32
    %266 = vector.broadcast %cst_92 : f32 to vector<8x128xf32>
    %267 = arith.mulf %266, %223 : vector<8x128xf32>
    %268 = arith.addf %265, %267 : vector<8x128xf32>
    %269 = arith.subf %263, %268 : vector<8x128xf32>
    %270 = tpu.reciprocal %238 {approx = true} : vector<8x128xf32> -> vector<8x128xf32>
    %271 = arith.mulf %238, %270 : vector<8x128xf32>
    %cst_93 = arith.constant 2.000000e+00 : f32
    %272 = vector.broadcast %cst_93 : f32 to vector<8x128xf32>
    %273 = arith.subf %272, %271 : vector<8x128xf32>
    %274 = arith.mulf %270, %273 : vector<8x128xf32>
    %cst_94 = arith.constant 4.500000e-02 : f32
    %275 = vector.broadcast %cst_94 : f32 to vector<8x128xf32>
    %276 = arith.mulf %275, %261 : vector<8x128xf32>
    %277 = arith.mulf %242, %269 : vector<8x128xf32>
    %278 = arith.addf %276, %277 : vector<8x128xf32>
    %279 = arith.mulf %278, %274 : vector<8x128xf32>
    %280 = arith.mulf %242, %261 : vector<8x128xf32>
    %281 = arith.mulf %246, %269 : vector<8x128xf32>
    %282 = arith.addf %280, %281 : vector<8x128xf32>
    %283 = arith.mulf %282, %274 : vector<8x128xf32>
    %cst_95 = arith.constant 1.250000e-01 : f32
    %284 = vector.broadcast %cst_95 : f32 to vector<8x128xf32>
    %285 = arith.mulf %284, %220 : vector<8x128xf32>
    %286 = arith.addf %214, %285 : vector<8x128xf32>
    %cst_96 = arith.constant 1.250000e-01 : f32
    %287 = vector.broadcast %cst_96 : f32 to vector<8x128xf32>
    %288 = arith.mulf %287, %223 : vector<8x128xf32>
    %289 = arith.addf %217, %288 : vector<8x128xf32>
    %cst_97 = arith.constant 1.250000e-01 : f32
    %290 = vector.broadcast %cst_97 : f32 to vector<8x128xf32>
    %291 = arith.mulf %290, %279 : vector<8x128xf32>
    %292 = arith.addf %220, %291 : vector<8x128xf32>
    %cst_98 = arith.constant 1.250000e-01 : f32
    %293 = vector.broadcast %cst_98 : f32 to vector<8x128xf32>
    %294 = arith.mulf %293, %283 : vector<8x128xf32>
    %295 = arith.addf %223, %294 : vector<8x128xf32>
    %c4 = arith.constant 4 : index
    %c0_99 = arith.constant 0 : index
    %c0_100 = arith.constant 0 : index
    %c0_101 = arith.constant 0 : index
    %296 = vector.load %arg2[%c4, %c0_99, %c0_100, %c0_101] : memref<8x2x8x128xf32, #tpu.memory_space<vmem>>, vector<1x2x8x128xf32>
    %297 = vector.shape_cast %296 : vector<1x2x8x128xf32> to vector<2x8x128xf32>
    %298 = vector.extract_strided_slice %297 {offsets = [0, 0, 0], sizes = [1, 8, 128], strides = [1, 1, 1]} : vector<2x8x128xf32> to vector<1x8x128xf32>
    %299 = vector.shape_cast %298 : vector<1x8x128xf32> to vector<8x128xf32>
    %300 = vector.extract_strided_slice %297 {offsets = [1, 0, 0], sizes = [1, 8, 128], strides = [1, 1, 1]} : vector<2x8x128xf32> to vector<1x8x128xf32>
    %301 = vector.shape_cast %300 : vector<1x8x128xf32> to vector<8x128xf32>
    %302 = math.cos %289 : vector<8x128xf32>
    %303 = math.sin %289 : vector<8x128xf32>
    %cst_102 = arith.constant 4.800000e-02 : f32
    %304 = vector.broadcast %cst_102 : f32 to vector<8x128xf32>
    %305 = arith.mulf %304, %302 : vector<8x128xf32>
    %cst_103 = arith.constant 4.800000e-02 : f32
    %306 = vector.broadcast %cst_103 : f32 to vector<8x128xf32>
    %307 = arith.mulf %306, %303 : vector<8x128xf32>
    %308 = arith.mulf %305, %305 : vector<8x128xf32>
    %cst_104 = arith.constant 5.625000e-03 : f32
    %309 = vector.broadcast %cst_104 : f32 to vector<8x128xf32>
    %310 = arith.subf %309, %308 : vector<8x128xf32>
    %cst_105 = arith.constant 4.500000e-02 : f32
    %311 = vector.broadcast %cst_105 : f32 to vector<8x128xf32>
    %312 = arith.addf %311, %305 : vector<8x128xf32>
    %cst_106 = arith.constant 0.000000e+00 : f32
    %313 = vector.broadcast %cst_106 : f32 to vector<8x128xf32>
    %314 = arith.subf %313, %312 : vector<8x128xf32>
    %cst_107 = arith.constant 2.000000e+00 : f32
    %315 = vector.broadcast %cst_107 : f32 to vector<8x128xf32>
    %316 = arith.mulf %315, %305 : vector<8x128xf32>
    %cst_108 = arith.constant 1.700000e-01 : f32
    %317 = vector.broadcast %cst_108 : f32 to vector<8x128xf32>
    %318 = arith.addf %317, %316 : vector<8x128xf32>
    %cst_109 = arith.constant 0.000000e+00 : f32
    %319 = vector.broadcast %cst_109 : f32 to vector<8x128xf32>
    %320 = arith.subf %319, %295 : vector<8x128xf32>
    %cst_110 = arith.constant 2.000000e+00 : f32
    %321 = vector.broadcast %cst_110 : f32 to vector<8x128xf32>
    %322 = arith.mulf %321, %292 : vector<8x128xf32>
    %323 = arith.addf %322, %295 : vector<8x128xf32>
    %324 = arith.mulf %320, %323 : vector<8x128xf32>
    %325 = arith.mulf %292, %292 : vector<8x128xf32>
    %326 = arith.mulf %307, %324 : vector<8x128xf32>
    %327 = arith.subf %299, %326 : vector<8x128xf32>
    %cst_111 = arith.constant 5.000000e-02 : f32
    %328 = vector.broadcast %cst_111 : f32 to vector<8x128xf32>
    %329 = arith.mulf %328, %292 : vector<8x128xf32>
    %cst_112 = arith.constant 2.500000e-02 : f32
    %330 = vector.broadcast %cst_112 : f32 to vector<8x128xf32>
    %331 = arith.mulf %330, %295 : vector<8x128xf32>
    %332 = arith.addf %329, %331 : vector<8x128xf32>
    %333 = arith.subf %327, %332 : vector<8x128xf32>
    %334 = arith.mulf %307, %325 : vector<8x128xf32>
    %335 = arith.subf %301, %334 : vector<8x128xf32>
    %cst_113 = arith.constant 2.500000e-02 : f32
    %336 = vector.broadcast %cst_113 : f32 to vector<8x128xf32>
    %337 = arith.mulf %336, %292 : vector<8x128xf32>
    %cst_114 = arith.constant 5.000000e-02 : f32
    %338 = vector.broadcast %cst_114 : f32 to vector<8x128xf32>
    %339 = arith.mulf %338, %295 : vector<8x128xf32>
    %340 = arith.addf %337, %339 : vector<8x128xf32>
    %341 = arith.subf %335, %340 : vector<8x128xf32>
    %342 = tpu.reciprocal %310 {approx = true} : vector<8x128xf32> -> vector<8x128xf32>
    %343 = arith.mulf %310, %342 : vector<8x128xf32>
    %cst_115 = arith.constant 2.000000e+00 : f32
    %344 = vector.broadcast %cst_115 : f32 to vector<8x128xf32>
    %345 = arith.subf %344, %343 : vector<8x128xf32>
    %346 = arith.mulf %342, %345 : vector<8x128xf32>
    %cst_116 = arith.constant 4.500000e-02 : f32
    %347 = vector.broadcast %cst_116 : f32 to vector<8x128xf32>
    %348 = arith.mulf %347, %333 : vector<8x128xf32>
    %349 = arith.mulf %314, %341 : vector<8x128xf32>
    %350 = arith.addf %348, %349 : vector<8x128xf32>
    %351 = arith.mulf %350, %346 : vector<8x128xf32>
    %352 = arith.mulf %314, %333 : vector<8x128xf32>
    %353 = arith.mulf %318, %341 : vector<8x128xf32>
    %354 = arith.addf %352, %353 : vector<8x128xf32>
    %355 = arith.mulf %354, %346 : vector<8x128xf32>
    %cst_117 = arith.constant 1.250000e-01 : f32
    %356 = vector.broadcast %cst_117 : f32 to vector<8x128xf32>
    %357 = arith.mulf %356, %292 : vector<8x128xf32>
    %358 = arith.addf %286, %357 : vector<8x128xf32>
    %cst_118 = arith.constant 1.250000e-01 : f32
    %359 = vector.broadcast %cst_118 : f32 to vector<8x128xf32>
    %360 = arith.mulf %359, %295 : vector<8x128xf32>
    %361 = arith.addf %289, %360 : vector<8x128xf32>
    %cst_119 = arith.constant 1.250000e-01 : f32
    %362 = vector.broadcast %cst_119 : f32 to vector<8x128xf32>
    %363 = arith.mulf %362, %351 : vector<8x128xf32>
    %364 = arith.addf %292, %363 : vector<8x128xf32>
    %cst_120 = arith.constant 1.250000e-01 : f32
    %365 = vector.broadcast %cst_120 : f32 to vector<8x128xf32>
    %366 = arith.mulf %365, %355 : vector<8x128xf32>
    %367 = arith.addf %295, %366 : vector<8x128xf32>
    %c5 = arith.constant 5 : index
    %c0_121 = arith.constant 0 : index
    %c0_122 = arith.constant 0 : index
    %c0_123 = arith.constant 0 : index
    %368 = vector.load %arg2[%c5, %c0_121, %c0_122, %c0_123] : memref<8x2x8x128xf32, #tpu.memory_space<vmem>>, vector<1x2x8x128xf32>
    %369 = vector.shape_cast %368 : vector<1x2x8x128xf32> to vector<2x8x128xf32>
    %370 = vector.extract_strided_slice %369 {offsets = [0, 0, 0], sizes = [1, 8, 128], strides = [1, 1, 1]} : vector<2x8x128xf32> to vector<1x8x128xf32>
    %371 = vector.shape_cast %370 : vector<1x8x128xf32> to vector<8x128xf32>
    %372 = vector.extract_strided_slice %369 {offsets = [1, 0, 0], sizes = [1, 8, 128], strides = [1, 1, 1]} : vector<2x8x128xf32> to vector<1x8x128xf32>
    %373 = vector.shape_cast %372 : vector<1x8x128xf32> to vector<8x128xf32>
    %374 = math.cos %361 : vector<8x128xf32>
    %375 = math.sin %361 : vector<8x128xf32>
    %cst_124 = arith.constant 4.800000e-02 : f32
    %376 = vector.broadcast %cst_124 : f32 to vector<8x128xf32>
    %377 = arith.mulf %376, %374 : vector<8x128xf32>
    %cst_125 = arith.constant 4.800000e-02 : f32
    %378 = vector.broadcast %cst_125 : f32 to vector<8x128xf32>
    %379 = arith.mulf %378, %375 : vector<8x128xf32>
    %380 = arith.mulf %377, %377 : vector<8x128xf32>
    %cst_126 = arith.constant 5.625000e-03 : f32
    %381 = vector.broadcast %cst_126 : f32 to vector<8x128xf32>
    %382 = arith.subf %381, %380 : vector<8x128xf32>
    %cst_127 = arith.constant 4.500000e-02 : f32
    %383 = vector.broadcast %cst_127 : f32 to vector<8x128xf32>
    %384 = arith.addf %383, %377 : vector<8x128xf32>
    %cst_128 = arith.constant 0.000000e+00 : f32
    %385 = vector.broadcast %cst_128 : f32 to vector<8x128xf32>
    %386 = arith.subf %385, %384 : vector<8x128xf32>
    %cst_129 = arith.constant 2.000000e+00 : f32
    %387 = vector.broadcast %cst_129 : f32 to vector<8x128xf32>
    %388 = arith.mulf %387, %377 : vector<8x128xf32>
    %cst_130 = arith.constant 1.700000e-01 : f32
    %389 = vector.broadcast %cst_130 : f32 to vector<8x128xf32>
    %390 = arith.addf %389, %388 : vector<8x128xf32>
    %cst_131 = arith.constant 0.000000e+00 : f32
    %391 = vector.broadcast %cst_131 : f32 to vector<8x128xf32>
    %392 = arith.subf %391, %367 : vector<8x128xf32>
    %cst_132 = arith.constant 2.000000e+00 : f32
    %393 = vector.broadcast %cst_132 : f32 to vector<8x128xf32>
    %394 = arith.mulf %393, %364 : vector<8x128xf32>
    %395 = arith.addf %394, %367 : vector<8x128xf32>
    %396 = arith.mulf %392, %395 : vector<8x128xf32>
    %397 = arith.mulf %364, %364 : vector<8x128xf32>
    %398 = arith.mulf %379, %396 : vector<8x128xf32>
    %399 = arith.subf %371, %398 : vector<8x128xf32>
    %cst_133 = arith.constant 5.000000e-02 : f32
    %400 = vector.broadcast %cst_133 : f32 to vector<8x128xf32>
    %401 = arith.mulf %400, %364 : vector<8x128xf32>
    %cst_134 = arith.constant 2.500000e-02 : f32
    %402 = vector.broadcast %cst_134 : f32 to vector<8x128xf32>
    %403 = arith.mulf %402, %367 : vector<8x128xf32>
    %404 = arith.addf %401, %403 : vector<8x128xf32>
    %405 = arith.subf %399, %404 : vector<8x128xf32>
    %406 = arith.mulf %379, %397 : vector<8x128xf32>
    %407 = arith.subf %373, %406 : vector<8x128xf32>
    %cst_135 = arith.constant 2.500000e-02 : f32
    %408 = vector.broadcast %cst_135 : f32 to vector<8x128xf32>
    %409 = arith.mulf %408, %364 : vector<8x128xf32>
    %cst_136 = arith.constant 5.000000e-02 : f32
    %410 = vector.broadcast %cst_136 : f32 to vector<8x128xf32>
    %411 = arith.mulf %410, %367 : vector<8x128xf32>
    %412 = arith.addf %409, %411 : vector<8x128xf32>
    %413 = arith.subf %407, %412 : vector<8x128xf32>
    %414 = tpu.reciprocal %382 {approx = true} : vector<8x128xf32> -> vector<8x128xf32>
    %415 = arith.mulf %382, %414 : vector<8x128xf32>
    %cst_137 = arith.constant 2.000000e+00 : f32
    %416 = vector.broadcast %cst_137 : f32 to vector<8x128xf32>
    %417 = arith.subf %416, %415 : vector<8x128xf32>
    %418 = arith.mulf %414, %417 : vector<8x128xf32>
    %cst_138 = arith.constant 4.500000e-02 : f32
    %419 = vector.broadcast %cst_138 : f32 to vector<8x128xf32>
    %420 = arith.mulf %419, %405 : vector<8x128xf32>
    %421 = arith.mulf %386, %413 : vector<8x128xf32>
    %422 = arith.addf %420, %421 : vector<8x128xf32>
    %423 = arith.mulf %422, %418 : vector<8x128xf32>
    %424 = arith.mulf %386, %405 : vector<8x128xf32>
    %425 = arith.mulf %390, %413 : vector<8x128xf32>
    %426 = arith.addf %424, %425 : vector<8x128xf32>
    %427 = arith.mulf %426, %418 : vector<8x128xf32>
    %cst_139 = arith.constant 1.250000e-01 : f32
    %428 = vector.broadcast %cst_139 : f32 to vector<8x128xf32>
    %429 = arith.mulf %428, %364 : vector<8x128xf32>
    %430 = arith.addf %358, %429 : vector<8x128xf32>
    %cst_140 = arith.constant 1.250000e-01 : f32
    %431 = vector.broadcast %cst_140 : f32 to vector<8x128xf32>
    %432 = arith.mulf %431, %367 : vector<8x128xf32>
    %433 = arith.addf %361, %432 : vector<8x128xf32>
    %cst_141 = arith.constant 1.250000e-01 : f32
    %434 = vector.broadcast %cst_141 : f32 to vector<8x128xf32>
    %435 = arith.mulf %434, %423 : vector<8x128xf32>
    %436 = arith.addf %364, %435 : vector<8x128xf32>
    %cst_142 = arith.constant 1.250000e-01 : f32
    %437 = vector.broadcast %cst_142 : f32 to vector<8x128xf32>
    %438 = arith.mulf %437, %427 : vector<8x128xf32>
    %439 = arith.addf %367, %438 : vector<8x128xf32>
    %c6 = arith.constant 6 : index
    %c0_143 = arith.constant 0 : index
    %c0_144 = arith.constant 0 : index
    %c0_145 = arith.constant 0 : index
    %440 = vector.load %arg2[%c6, %c0_143, %c0_144, %c0_145] : memref<8x2x8x128xf32, #tpu.memory_space<vmem>>, vector<1x2x8x128xf32>
    %441 = vector.shape_cast %440 : vector<1x2x8x128xf32> to vector<2x8x128xf32>
    %442 = vector.extract_strided_slice %441 {offsets = [0, 0, 0], sizes = [1, 8, 128], strides = [1, 1, 1]} : vector<2x8x128xf32> to vector<1x8x128xf32>
    %443 = vector.shape_cast %442 : vector<1x8x128xf32> to vector<8x128xf32>
    %444 = vector.extract_strided_slice %441 {offsets = [1, 0, 0], sizes = [1, 8, 128], strides = [1, 1, 1]} : vector<2x8x128xf32> to vector<1x8x128xf32>
    %445 = vector.shape_cast %444 : vector<1x8x128xf32> to vector<8x128xf32>
    %446 = math.cos %433 : vector<8x128xf32>
    %447 = math.sin %433 : vector<8x128xf32>
    %cst_146 = arith.constant 4.800000e-02 : f32
    %448 = vector.broadcast %cst_146 : f32 to vector<8x128xf32>
    %449 = arith.mulf %448, %446 : vector<8x128xf32>
    %cst_147 = arith.constant 4.800000e-02 : f32
    %450 = vector.broadcast %cst_147 : f32 to vector<8x128xf32>
    %451 = arith.mulf %450, %447 : vector<8x128xf32>
    %452 = arith.mulf %449, %449 : vector<8x128xf32>
    %cst_148 = arith.constant 5.625000e-03 : f32
    %453 = vector.broadcast %cst_148 : f32 to vector<8x128xf32>
    %454 = arith.subf %453, %452 : vector<8x128xf32>
    %cst_149 = arith.constant 4.500000e-02 : f32
    %455 = vector.broadcast %cst_149 : f32 to vector<8x128xf32>
    %456 = arith.addf %455, %449 : vector<8x128xf32>
    %cst_150 = arith.constant 0.000000e+00 : f32
    %457 = vector.broadcast %cst_150 : f32 to vector<8x128xf32>
    %458 = arith.subf %457, %456 : vector<8x128xf32>
    %cst_151 = arith.constant 2.000000e+00 : f32
    %459 = vector.broadcast %cst_151 : f32 to vector<8x128xf32>
    %460 = arith.mulf %459, %449 : vector<8x128xf32>
    %cst_152 = arith.constant 1.700000e-01 : f32
    %461 = vector.broadcast %cst_152 : f32 to vector<8x128xf32>
    %462 = arith.addf %461, %460 : vector<8x128xf32>
    %cst_153 = arith.constant 0.000000e+00 : f32
    %463 = vector.broadcast %cst_153 : f32 to vector<8x128xf32>
    %464 = arith.subf %463, %439 : vector<8x128xf32>
    %cst_154 = arith.constant 2.000000e+00 : f32
    %465 = vector.broadcast %cst_154 : f32 to vector<8x128xf32>
    %466 = arith.mulf %465, %436 : vector<8x128xf32>
    %467 = arith.addf %466, %439 : vector<8x128xf32>
    %468 = arith.mulf %464, %467 : vector<8x128xf32>
    %469 = arith.mulf %436, %436 : vector<8x128xf32>
    %470 = arith.mulf %451, %468 : vector<8x128xf32>
    %471 = arith.subf %443, %470 : vector<8x128xf32>
    %cst_155 = arith.constant 5.000000e-02 : f32
    %472 = vector.broadcast %cst_155 : f32 to vector<8x128xf32>
    %473 = arith.mulf %472, %436 : vector<8x128xf32>
    %cst_156 = arith.constant 2.500000e-02 : f32
    %474 = vector.broadcast %cst_156 : f32 to vector<8x128xf32>
    %475 = arith.mulf %474, %439 : vector<8x128xf32>
    %476 = arith.addf %473, %475 : vector<8x128xf32>
    %477 = arith.subf %471, %476 : vector<8x128xf32>
    %478 = arith.mulf %451, %469 : vector<8x128xf32>
    %479 = arith.subf %445, %478 : vector<8x128xf32>
    %cst_157 = arith.constant 2.500000e-02 : f32
    %480 = vector.broadcast %cst_157 : f32 to vector<8x128xf32>
    %481 = arith.mulf %480, %436 : vector<8x128xf32>
    %cst_158 = arith.constant 5.000000e-02 : f32
    %482 = vector.broadcast %cst_158 : f32 to vector<8x128xf32>
    %483 = arith.mulf %482, %439 : vector<8x128xf32>
    %484 = arith.addf %481, %483 : vector<8x128xf32>
    %485 = arith.subf %479, %484 : vector<8x128xf32>
    %486 = tpu.reciprocal %454 {approx = true} : vector<8x128xf32> -> vector<8x128xf32>
    %487 = arith.mulf %454, %486 : vector<8x128xf32>
    %cst_159 = arith.constant 2.000000e+00 : f32
    %488 = vector.broadcast %cst_159 : f32 to vector<8x128xf32>
    %489 = arith.subf %488, %487 : vector<8x128xf32>
    %490 = arith.mulf %486, %489 : vector<8x128xf32>
    %cst_160 = arith.constant 4.500000e-02 : f32
    %491 = vector.broadcast %cst_160 : f32 to vector<8x128xf32>
    %492 = arith.mulf %491, %477 : vector<8x128xf32>
    %493 = arith.mulf %458, %485 : vector<8x128xf32>
    %494 = arith.addf %492, %493 : vector<8x128xf32>
    %495 = arith.mulf %494, %490 : vector<8x128xf32>
    %496 = arith.mulf %458, %477 : vector<8x128xf32>
    %497 = arith.mulf %462, %485 : vector<8x128xf32>
    %498 = arith.addf %496, %497 : vector<8x128xf32>
    %499 = arith.mulf %498, %490 : vector<8x128xf32>
    %cst_161 = arith.constant 1.250000e-01 : f32
    %500 = vector.broadcast %cst_161 : f32 to vector<8x128xf32>
    %501 = arith.mulf %500, %436 : vector<8x128xf32>
    %502 = arith.addf %430, %501 : vector<8x128xf32>
    %cst_162 = arith.constant 1.250000e-01 : f32
    %503 = vector.broadcast %cst_162 : f32 to vector<8x128xf32>
    %504 = arith.mulf %503, %439 : vector<8x128xf32>
    %505 = arith.addf %433, %504 : vector<8x128xf32>
    %cst_163 = arith.constant 1.250000e-01 : f32
    %506 = vector.broadcast %cst_163 : f32 to vector<8x128xf32>
    %507 = arith.mulf %506, %495 : vector<8x128xf32>
    %508 = arith.addf %436, %507 : vector<8x128xf32>
    %cst_164 = arith.constant 1.250000e-01 : f32
    %509 = vector.broadcast %cst_164 : f32 to vector<8x128xf32>
    %510 = arith.mulf %509, %499 : vector<8x128xf32>
    %511 = arith.addf %439, %510 : vector<8x128xf32>
    %c7 = arith.constant 7 : index
    %c0_165 = arith.constant 0 : index
    %c0_166 = arith.constant 0 : index
    %c0_167 = arith.constant 0 : index
    %512 = vector.load %arg2[%c7, %c0_165, %c0_166, %c0_167] : memref<8x2x8x128xf32, #tpu.memory_space<vmem>>, vector<1x2x8x128xf32>
    %513 = vector.shape_cast %512 : vector<1x2x8x128xf32> to vector<2x8x128xf32>
    %514 = vector.extract_strided_slice %513 {offsets = [0, 0, 0], sizes = [1, 8, 128], strides = [1, 1, 1]} : vector<2x8x128xf32> to vector<1x8x128xf32>
    %515 = vector.shape_cast %514 : vector<1x8x128xf32> to vector<8x128xf32>
    %516 = vector.extract_strided_slice %513 {offsets = [1, 0, 0], sizes = [1, 8, 128], strides = [1, 1, 1]} : vector<2x8x128xf32> to vector<1x8x128xf32>
    %517 = vector.shape_cast %516 : vector<1x8x128xf32> to vector<8x128xf32>
    %518 = math.cos %505 : vector<8x128xf32>
    %519 = math.sin %505 : vector<8x128xf32>
    %cst_168 = arith.constant 4.800000e-02 : f32
    %520 = vector.broadcast %cst_168 : f32 to vector<8x128xf32>
    %521 = arith.mulf %520, %518 : vector<8x128xf32>
    %cst_169 = arith.constant 4.800000e-02 : f32
    %522 = vector.broadcast %cst_169 : f32 to vector<8x128xf32>
    %523 = arith.mulf %522, %519 : vector<8x128xf32>
    %524 = arith.mulf %521, %521 : vector<8x128xf32>
    %cst_170 = arith.constant 5.625000e-03 : f32
    %525 = vector.broadcast %cst_170 : f32 to vector<8x128xf32>
    %526 = arith.subf %525, %524 : vector<8x128xf32>
    %cst_171 = arith.constant 4.500000e-02 : f32
    %527 = vector.broadcast %cst_171 : f32 to vector<8x128xf32>
    %528 = arith.addf %527, %521 : vector<8x128xf32>
    %cst_172 = arith.constant 0.000000e+00 : f32
    %529 = vector.broadcast %cst_172 : f32 to vector<8x128xf32>
    %530 = arith.subf %529, %528 : vector<8x128xf32>
    %cst_173 = arith.constant 2.000000e+00 : f32
    %531 = vector.broadcast %cst_173 : f32 to vector<8x128xf32>
    %532 = arith.mulf %531, %521 : vector<8x128xf32>
    %cst_174 = arith.constant 1.700000e-01 : f32
    %533 = vector.broadcast %cst_174 : f32 to vector<8x128xf32>
    %534 = arith.addf %533, %532 : vector<8x128xf32>
    %cst_175 = arith.constant 0.000000e+00 : f32
    %535 = vector.broadcast %cst_175 : f32 to vector<8x128xf32>
    %536 = arith.subf %535, %511 : vector<8x128xf32>
    %cst_176 = arith.constant 2.000000e+00 : f32
    %537 = vector.broadcast %cst_176 : f32 to vector<8x128xf32>
    %538 = arith.mulf %537, %508 : vector<8x128xf32>
    %539 = arith.addf %538, %511 : vector<8x128xf32>
    %540 = arith.mulf %536, %539 : vector<8x128xf32>
    %541 = arith.mulf %508, %508 : vector<8x128xf32>
    %542 = arith.mulf %523, %540 : vector<8x128xf32>
    %543 = arith.subf %515, %542 : vector<8x128xf32>
    %cst_177 = arith.constant 5.000000e-02 : f32
    %544 = vector.broadcast %cst_177 : f32 to vector<8x128xf32>
    %545 = arith.mulf %544, %508 : vector<8x128xf32>
    %cst_178 = arith.constant 2.500000e-02 : f32
    %546 = vector.broadcast %cst_178 : f32 to vector<8x128xf32>
    %547 = arith.mulf %546, %511 : vector<8x128xf32>
    %548 = arith.addf %545, %547 : vector<8x128xf32>
    %549 = arith.subf %543, %548 : vector<8x128xf32>
    %550 = arith.mulf %523, %541 : vector<8x128xf32>
    %551 = arith.subf %517, %550 : vector<8x128xf32>
    %cst_179 = arith.constant 2.500000e-02 : f32
    %552 = vector.broadcast %cst_179 : f32 to vector<8x128xf32>
    %553 = arith.mulf %552, %508 : vector<8x128xf32>
    %cst_180 = arith.constant 5.000000e-02 : f32
    %554 = vector.broadcast %cst_180 : f32 to vector<8x128xf32>
    %555 = arith.mulf %554, %511 : vector<8x128xf32>
    %556 = arith.addf %553, %555 : vector<8x128xf32>
    %557 = arith.subf %551, %556 : vector<8x128xf32>
    %558 = tpu.reciprocal %526 {approx = true} : vector<8x128xf32> -> vector<8x128xf32>
    %559 = arith.mulf %526, %558 : vector<8x128xf32>
    %cst_181 = arith.constant 2.000000e+00 : f32
    %560 = vector.broadcast %cst_181 : f32 to vector<8x128xf32>
    %561 = arith.subf %560, %559 : vector<8x128xf32>
    %562 = arith.mulf %558, %561 : vector<8x128xf32>
    %cst_182 = arith.constant 4.500000e-02 : f32
    %563 = vector.broadcast %cst_182 : f32 to vector<8x128xf32>
    %564 = arith.mulf %563, %549 : vector<8x128xf32>
    %565 = arith.mulf %530, %557 : vector<8x128xf32>
    %566 = arith.addf %564, %565 : vector<8x128xf32>
    %567 = arith.mulf %566, %562 : vector<8x128xf32>
    %568 = arith.mulf %530, %549 : vector<8x128xf32>
    %569 = arith.mulf %534, %557 : vector<8x128xf32>
    %570 = arith.addf %568, %569 : vector<8x128xf32>
    %571 = arith.mulf %570, %562 : vector<8x128xf32>
    %cst_183 = arith.constant 1.250000e-01 : f32
    %572 = vector.broadcast %cst_183 : f32 to vector<8x128xf32>
    %573 = arith.mulf %572, %508 : vector<8x128xf32>
    %574 = arith.addf %502, %573 : vector<8x128xf32>
    %cst_184 = arith.constant 1.250000e-01 : f32
    %575 = vector.broadcast %cst_184 : f32 to vector<8x128xf32>
    %576 = arith.mulf %575, %511 : vector<8x128xf32>
    %577 = arith.addf %505, %576 : vector<8x128xf32>
    %cst_185 = arith.constant 1.250000e-01 : f32
    %578 = vector.broadcast %cst_185 : f32 to vector<8x128xf32>
    %579 = arith.mulf %578, %567 : vector<8x128xf32>
    %580 = arith.addf %508, %579 : vector<8x128xf32>
    %cst_186 = arith.constant 1.250000e-01 : f32
    %581 = vector.broadcast %cst_186 : f32 to vector<8x128xf32>
    %582 = arith.mulf %581, %571 : vector<8x128xf32>
    %583 = arith.addf %511, %582 : vector<8x128xf32>
    %c0_187 = arith.constant 0 : index
    %c0_188 = arith.constant 0 : index
    %c0_189 = arith.constant 0 : index
    %584 = vector.load %arg3[%c0_187, %c0_188, %c0_189] : memref<4x8x128xf32, #tpu.memory_space<vmem>>, vector<1x8x128xf32>
    %585 = vector.shape_cast %584 : vector<1x8x128xf32> to vector<8x128xf32>
    %586 = vector.shape_cast %574 : vector<8x128xf32> to vector<1x8x128xf32>
    tpu.vector_store %arg3[%c0_187, %c0_188, %c0_189], %586 {strides = array<i32>} : memref<4x8x128xf32, #tpu.memory_space<vmem>>, vector<1x8x128xf32>,
    %c1_190 = arith.constant 1 : index
    %c0_191 = arith.constant 0 : index
    %c0_192 = arith.constant 0 : index
    %587 = vector.load %arg3[%c1_190, %c0_191, %c0_192] : memref<4x8x128xf32, #tpu.memory_space<vmem>>, vector<1x8x128xf32>
    %588 = vector.shape_cast %587 : vector<1x8x128xf32> to vector<8x128xf32>
    %589 = vector.shape_cast %577 : vector<8x128xf32> to vector<1x8x128xf32>
    tpu.vector_store %arg3[%c1_190, %c0_191, %c0_192], %589 {strides = array<i32>} : memref<4x8x128xf32, #tpu.memory_space<vmem>>, vector<1x8x128xf32>,
    %c2_193 = arith.constant 2 : index
    %c0_194 = arith.constant 0 : index
    %c0_195 = arith.constant 0 : index
    %590 = vector.load %arg3[%c2_193, %c0_194, %c0_195] : memref<4x8x128xf32, #tpu.memory_space<vmem>>, vector<1x8x128xf32>
    %591 = vector.shape_cast %590 : vector<1x8x128xf32> to vector<8x128xf32>
    %592 = vector.shape_cast %580 : vector<8x128xf32> to vector<1x8x128xf32>
    tpu.vector_store %arg3[%c2_193, %c0_194, %c0_195], %592 {strides = array<i32>} : memref<4x8x128xf32, #tpu.memory_space<vmem>>, vector<1x8x128xf32>,
    %c3_196 = arith.constant 3 : index
    %c0_197 = arith.constant 0 : index
    %c0_198 = arith.constant 0 : index
    %593 = vector.load %arg3[%c3_196, %c0_197, %c0_198] : memref<4x8x128xf32, #tpu.memory_space<vmem>>, vector<1x8x128xf32>
    %594 = vector.shape_cast %593 : vector<1x8x128xf32> to vector<8x128xf32>
    %595 = vector.shape_cast %583 : vector<8x128xf32> to vector<1x8x128xf32>
    tpu.vector_store %arg3[%c3_196, %c0_197, %c0_198], %595 {strides = array<i32>} : memref<4x8x128xf32, #tpu.memory_space<vmem>>, vector<1x8x128xf32>,
    return
  }
  func.func @transform_0(%arg0: i32) -> (i32, i32, i32) {
    %c0_i32 = arith.constant 0 : i32
    %c0_i32_0 = arith.constant 0 : i32
    %c0_i32_1 = arith.constant 0 : i32
    return %c0_i32, %arg0, %c0_i32_0 : i32, i32, i32
  }
  func.func @transform_1(%arg0: i32) -> (i32, i32, i32, i32) {
    %c0_i32 = arith.constant 0 : i32
    %c0_i32_0 = arith.constant 0 : i32
    %c0_i32_1 = arith.constant 0 : i32
    %c0_i32_2 = arith.constant 0 : i32
    return %c0_i32, %c0_i32_0, %arg0, %c0_i32_1 : i32, i32, i32, i32
  }
  func.func @transform_2(%arg0: i32) -> (i32, i32, i32) {
    %c0_i32 = arith.constant 0 : i32
    %c0_i32_0 = arith.constant 0 : i32
    %c0_i32_1 = arith.constant 0 : i32
    return %c0_i32, %arg0, %c0_i32_0 : i32, i32, i32
  }
}

</mosaic_0001>

<bundles_post_ra>
// kernel: tpu_custom_call.1
= control target key start
LH: loop header
LB: loop body
LE: loop exit
PB: predicated region body
PF: predicated region fallthrough
CT: control target
= control target key end

     0   :  { %7 = vsyncpa [#allocation3], 0  ;;  %s3562_s0 = inlined_call_operand.hbm [shape: f32[4,16,128], index: 0, kind: input, shape index: {}]   ;;  %s3563_s1 = inlined_call_operand.hbm [shape: f32[8,2,16,128], index: 1, kind: input, shape index: {}]   ;;  %s3564_s2 = inlined_call_operand.hbm [shape: f32[4,16,128], index: 2, kind: output, shape index: {}]  }
   0x1   :  { %9 = vsyncpa [#allocation3 + $0x1], 0 }
   0x2   :  { %10 = vsyncpa [#allocation6], 0 }
   0x3   :  { %12 = vsyncpa [#allocation6 + $0x1], 0 }
   0x4   :  { %13 = vsyncpa [#allocation4], 0 }
   0x5   :  { %15 = vsyncpa [#allocation4 + $0x1], 0  ;;  %s2760_s9 = smov 0   ;;  %s2762_s10 = smov 0  }
   0x6   :  { %s2764_s11 = smov 0   ;;  %s2766_s12 = smov 0  }
   0x7 LB: > { %s2781_s13 = sadd.s32 4294967295, %s2728_s12   ;;  %s2362_s14 = sadd.s32 4294967294, %s2728_s12   ;;  %s2728_s12 = sphi %s2766_s12, %s3591_s12   ;;  %s2724_s11 = sphi %s2764_s11, %s3590_s11   ;;  %s2720_s10 = sphi %s2762_s10, %s3589_s10   ;;  %s2716_s9 = sphi %s2760_s9, %s3588_s9  }
   0x8   : > { %s2785_s15 = sadd.s32 1, %s2728_s12   ;;  %s28_s16 = sadd.s32 1, %s2724_s11 }
   0x9   : > { %s25_s17 = ssub.s32 %s2728_s12, %s2785_s15  ;;  %p35_p0 = scmp.ne.s32.totalorder %s2724_s11, %s2720_s10 }
   0xa   : > { %p26_p1 = scmp.eq.s32.totalorder %s25_s17, 0  ;;  %p36_p2 = scmp.eq.s32.totalorder %s2728_s12, 0 }
   0xb   : > { %p41_p3 = scmp.ne.s32.totalorder %s2720_s10, %s2716_s9  ;;  %p42_p4 = scmp.eq.s32.totalorder %s2781_s13, 0 }
   0xc   : > { %s2797_s18 = scalar_select %p26_p1, %s2724_s11, %s28_s16  }
   0xd   : > { %p2799_p5 = por %p36_p2, %p35_p0  ;;  %p2803_p6 = por %p42_p4, %p41_p3 }
   0xe   : > { %p91_p7 = scmp.eq.s32.totalorder %s2781_s13, 1  ;;  %p97_p8 = scmp.eq.s32.totalorder %s2362_s14, 1 }
   0xf   : > { %s3568_s20 = scalar_select %p2803_p6, 1, 0 }
  0x10   : > { %p2510_p10 = scmp.lt.s32.totalorder %s2728_s12, 2  ;;  %p2810_p11 = por %p91_p7, %p35_p0 }
  0x11   : > { %p2814_p12 = por %p97_p8, %p41_p3  ;;  %s2819_s23 = sand.u32 1, %s2724_s11  }
  0x12   : > { %s3569_s21 = scalar_select %p2810_p11, 1, 0 }
  0x13   : > { %s3570_s22 = scalar_select %p2814_p12, 1, 0 }
  0x14   : > { %s2366_s24 = sshll.u32 %s2728_s12, 7  ;;  %s2365_s25 = sshll.u32 %s2819_s23, 5 }
  0x15   : > { %s2828_s28 = scalar_lea.hbm %s3562_s0, %s2366_s24  ;;  %s121_s29 = scalar_lea.vmem [#allocation2], %s2365_s25 }
  0x16   : > { %s127_s30 = sshll.u32 %s121_s29, 4  ;;  %p2832_p13 = pnand %p2510_p10, %p2799_p5  ;;  %s2836_s30 = int_to_ptr.vmem [resolvable:$true] %s127_s30 }
  0x17   : > { %s118_s4 = scalar_lea.sflag [#allocation3], %s2819_s23  ;;  %s2604_s5 = scalar_lea.hbm %s2828_s28, 512 }
  0x18   : > { %p2605_p1 = scmp.ne.s32.totalorder %s2828_s28, %s2604_s5  ;;  %p2606_p2 = pneg %p2832_p13 }
  0x19   : > { %s2609_s8 = scalar_lea.hbm %s3562_s0, 1024  ;;  %p2610_p5 = scmp.lt.s32.totalorder %s2828_s28, %s3562_s0 }
  0x1a   : > { %p2607_p3 = pnand %p2606_p2, %p2605_p1  ;;  %p2611_p7 = scmp.lt.s32.totalorder %s2609_s8, %s2604_s5 }
  0x1c   : > { %p2608_p4 = pneg %p2607_p3  ;;  %p2612_p8 = por %p2611_p7, %p2610_p5 }
  0x1e   : > { %p2613_p10 = pnand %p2612_p8, %p2608_p4 }
  0x20   : > { %2616 = shalt.err (!%p2613_p10)
}
  0x21   : > { %s2617_s17 = scalar_lea.vmem %s2836_s30, 512  ;;  %s2730_s19 = smov [#allocation2]  }
  0x22   : > { %p2618_p9 = scmp.ne.s32.totalorder %s2836_s30, %s2617_s17  ;;  %s2622_s25 = sshll.u32 %s2730_s19, 4  ;;  %s2623_s25 = int_to_ptr.vmem [resolvable:$false] %s2622_s25 }
  0x23   : > { %s2624_s26 = scalar_lea.vmem %s2623_s25, 1024  ;;  %p2625_p0 = scmp.lt.s32.totalorder %s2836_s30, %s2623_s25 }
  0x24   : > { %p2620_p1 = pnand %p2618_p9, %p2606_p2  ;;  %p2626_p12 = scmp.lt.s32.totalorder %s2624_s26, %s2617_s17 }
  0x26   : > { %p2621_p3 = pneg %p2620_p1  ;;  %p2627_p11 = por %p2626_p12, %p2625_p0 }
  0x28   : > { %p2628_p5 = pnand %p2627_p11, %p2621_p3 }
  0x2a   : > { %2631 = shalt.err (!%p2628_p5)
}
  0x2b   : > { %s2731_s27 = smov 256   ;;  %s2732_s29 = smov 128  }
  0x2c   : > { %s2733_s5 = smov 8   ;;  %p155_p9 = scmp.lt.s32.totalorder %s2728_s12, 3 }
  0x2d   : > { %2502 = dma.hbm_to_vmem [thread:$0]  (!%p2832_p13), %s2828_s28, 512, %s2836_s30, %s118_s4, %s2731_s27, %s2732_s29, %s2733_s5  }
  0x2e   : > { %s2367_s6 = sshll.u32 %s2819_s23, 7  ;;  %s2876_s14 = scalar_lea.hbm %s3563_s1, %s2366_s24 }
  0x2f   : > { %p3572_p11 = scmp.ge.s32.totalorder %s2728_s12, 1  ;;  %s141_s17 = scalar_lea.vmem [#allocation5], %s2367_s6 }
  0x30   : > { %s147_s19 = sshll.u32 %s141_s17, 4  ;;  %s138_s28 = scalar_lea.sflag [#allocation6], %s2819_s23  ;;  %s2884_s19 = int_to_ptr.vmem [resolvable:$true] %s147_s19 }
  0x31   : > { %p2880_p12 = pnand %p3572_p11, %p155_p9  ;;  %s2632_s30 = scalar_lea.hbm %s2876_s14, 2048 }
  0x32   : > { %p2633_p0 = scmp.ne.s32.totalorder %s2876_s14, %s2632_s30  ;;  %s2637_s25 = scalar_lea.hbm %s3563_s1, 4096 }
  0x33   : > { %p2638_p8 = scmp.lt.s32.totalorder %s2876_s14, %s3563_s1  ;;  %p2639_p10 = scmp.lt.s32.totalorder %s2637_s25, %s2632_s30 }
  0x34   : > { %p2635_p4 = pnand %p2633_p0, %p2606_p2 }
  0x35   : > { %p2640_p1 = por %p2639_p10, %p2638_p8 }
  0x36   : > { %p2636_p7 = pneg %p2635_p4 }
  0x38   : > { %p2641_p3 = pnand %p2640_p1, %p2636_p7 }
  0x3a   : > { %2644 = shalt.err (!%p2641_p3)
}
  0x3b   : > { %s2645_s23 = scalar_lea.vmem %s2884_s19, 2048  ;;  %s2734_s6 = smov [#allocation5]  }
  0x3c   : > { %p2646_p5 = scmp.ne.s32.totalorder %s2884_s19, %s2645_s23  ;;  %s2650_s8 = sshll.u32 %s2734_s6, 4  ;;  %s2651_s8 = int_to_ptr.vmem [resolvable:$false] %s2650_s8 }
  0x3d   : > { %s2652_s17 = scalar_lea.vmem %s2651_s8, 4096  ;;  %p2653_p0 = scmp.lt.s32.totalorder %s2884_s19, %s2651_s8 }
  0x3e   : > { %p2648_p9 = pnand %p2646_p5, %p2606_p2  ;;  %p2654_p4 = scmp.lt.s32.totalorder %s2652_s17, %s2645_s23 }
  0x40   : > { %p2649_p11 = pneg %p2648_p9  ;;  %p2655_p6 = por %p2654_p4, %p2653_p0 }
  0x42   : > { %p2656_p8 = pnand %p2655_p6, %p2649_p11 }
  0x44   : > { %2659 = shalt.err (!%p2656_p8)
}
  0x45   : > { %2505 = dma.hbm_to_vmem [thread:$0]  (!%p2832_p13), %s2876_s14, 2048, %s2884_s19, %s138_s28, %s2731_s27, %s2732_s29, %s2733_s5  }
  0x46   : > { %159 = sbr.rel (%p2880_p12) target bundleno = 604 (0x25c), region = 28  ;;  %s2915_s30 = sand.u32 (!%p2880_p12), 1, %s2720_s10  }
  0x47   : > { %s2370_s24 = sshll.u32 (!%p2880_p12), %s2915_s30, 5  ;;  %s162_s4 = scalar_lea.sflag (!%p2880_p12), [#allocation3], %s2915_s30 }
  0x48   : > { %s2921_s3 = scalar_lea.vmem (!%p2880_p12), [#allocation2], %s2370_s24  ;;  %p3574_p6 = scmp.ne.s32.totalorder (!%p2880_p12), %s3568_s20, 0 }
  0x4b   : > { %2703 = dma.done.wait (%p3574_p6), %s162_s4, 512  }
  0x4c   : > { %2705 = vsyncadd (%p3574_p6), %s162_s4, 4294966784  ;;  %s2371_s27 = sshll.u32 %s2915_s30, 7  ;;  %s171_s29 = scalar_lea.sflag [#allocation6], %s2915_s30 }
  0x4d   : > { %s2929_s5 = scalar_lea.vmem [#allocation5], %s2371_s27 }
  0x4e   : > { %2707 = dma.done.wait (%p3574_p6), %s171_s29, 2048  }
  0x4f   : > { %2709 = vsyncadd (%p3574_p6), %s171_s29, 4294965248  ;;  %v2936_v0 = vld [vmem:[%s2921_s3 + $0x8] sm:$0xff]  ;;  %v2939_v1 = vld [vmem:[%s2921_s3 + $0x18] sm:$0xff]  ;;  %v2735_v18 = vmov 683565275   ;;  %s3506_s20 = scalar_lea.vmem [#allocation7], %s2370_s24 }
  0x50   : > { %v212_v2 = vand.u32 2139095040, %v2936_v0  ;;  %v209_v3 = vand.u32 2147483647, %v2936_v0  ;;  %v455_v5 = vmul.f32 0.125, %v2939_v1  ;;  %v2736_v20 = vmov 2475754826  }
  0x51   : > { %v2737_v22 = vmov 2131351028   ;;  %v2738_v24 = vmov 2102212464   ;;  %v2739_v26 = vmov 920167782  }
  0x52   : > { %v213_v4 = vshrl.u32 %v212_v2, 23  ;;  %v216_v7 = vand.u32 8388607, %v209_v3  ;;  %v2947_v8 = vadd.f32 %v2936_v0, %v455_v5  ;;  %v2740_v35 = vmov 1326507024   ;;  %s2458_s14 = sshll.u32 %s2781_s13, 7 }
  0x53   : > { %vm211_vm13 = vcmp.lt.s32.totalorder %v2936_v0, 0  ;;  %vm3009_vm14 = vcmp.le.f32.partialorder %v209_v3, 0.7853982  ;;  %s2266_s16 = sshll.u32 %s3506_s20, 4  ;;  %s3515_s25 = scalar_lea.hbm %s3564_s2, %s2458_s14  ;;  %s3517_s16 = int_to_ptr.vmem [resolvable:$true] %s2266_s16 }
  0x54   : > { %v2376_v6 = vadd.s32 4294967169, %v213_v4  ;;  %v467_v10 = vand.u32 2139095040, %v2947_v8  ;;  %v217_v11 = vor.u32 8388608, %v216_v7  ;;  %v464_v29 = vand.u32 2147483647, %v2947_v8  ;;  %s2254_s13 = scalar_lea.sflag [#allocation4], %s2915_s30 }
  0x55   : > { %s2660_s26 = scalar_lea.vmem %s3517_s16, 512  ;;  %p3585_p2 = scmp.ne.s32.totalorder %s3569_s21, 0 }
  0x56   : > { %v219_v9 = vadd.s32 1, %v2376_v6  ;;  %v468_v13 = vshrl.u32 %v467_v10, 23  ;;  %v257_v28 = vshll.u32 %v217_v11, 8  ;;  %v471_v52 = vand.u32 8388607, %v464_v29  ;;  %p2661_p13 = scmp.ne.s32.totalorder %s3517_s16, %s2660_s26  ;;  %s2741_s7 = smov [#allocation7]  }
  0x57   : > { %s2664_s23 = sshll.u32 %s2741_s7, 4  ;;  %s2665_s23 = int_to_ptr.vmem [resolvable:$false] %s2664_s23 }
  0x58   : > { %vm220_vm0 = vcmp.gt.s32.totalorder %v219_v9, 0  ;;  %v2386_v16 = vadd.s32 4294967169, %v468_v13  ;;  %v472_v2 = vor.u32 8388608, %v471_v52  ;;  %p2662_p12 = pnand %p2661_p13, %p3585_p2  ;;  %s2666_s6 = scalar_lea.vmem %s2665_s23, 1024 }
  0x59   : > { %v221_v12 = vsel %vm220_vm0, %v219_v9, 0  ;;  %vm466_vm0 = vcmp.lt.s32.totalorder %v2947_v8, 0  ;;  %p2667_p10 = scmp.lt.s32.totalorder %s3517_s16, %s2665_s23  ;;  %p2668_p1 = scmp.lt.s32.totalorder %s2666_s6, %s2660_s26 }
  0x5a   : > { %v223_v14 = vand.u32 31, %v221_v12  ;;  %v222_v15 = vshrl.u32 %v221_v12, 5  ;;  %v474_v40 = vadd.s32 1, %v2386_v16  ;;  %p2663_p7 = pneg %p2662_p12 }
  0x5b   : > { %p2669_p3 = por %p2668_p1, %p2667_p10 }
  0x5c   : > { %v224_v17 = vsub.s32 32, %v223_v14  ;;  %v226_v19 = vshll.u32 %v2735_v18, %v223_v14  ;;  %v229_v21 = vshll.u32 %v2736_v20, %v223_v14  ;;  %v232_v23 = vshll.u32 %v2737_v22, %v223_v14 }
  0x5d   : > { %v235_v25 = vshll.u32 %v2738_v24, %v223_v14  ;;  %v238_v27 = vshll.u32 %v2739_v26, %v223_v14  ;;  %vm241_vm1 = vcmp.lt.s32.totalorder %v222_v15, 1  ;;  %vm244_vm2 = vcmp.lt.s32.totalorder %v222_v15, 4  ;;  %p2670_p5 = pnand %p2669_p3, %p2663_p7 }
  0x5e   : > { %v225_v30 = vshrl.u32 %v2735_v18, %v224_v17  ;;  %v227_v31 = vshrl.u32 %v2736_v20, %v224_v17  ;;  %v230_v32 = vshrl.u32 %v2737_v22, %v224_v17  ;;  %v233_v33 = vshrl.u32 %v2738_v24, %v224_v17 }
  0x5f   : > { %v236_v34 = vshrl.u32 %v2739_v26, %v224_v17  ;;  %v239_v36 = vshrl.u32 %v2740_v35, %v224_v17  ;;  %vm242_vm3 = vcmp.lt.s32.totalorder %v222_v15, 2  ;;  %vm243_vm4 = vcmp.lt.s32.totalorder %v222_v15, 3 }
  0x60   : > { %v228_v37 = vor.u32 %v227_v31, %v226_v19  ;;  %v231_v38 = vor.u32 %v230_v32, %v229_v21  ;;  %v234_v39 = vor.u32 %v233_v33, %v232_v23  ;;  %vm475_vm5 = vcmp.gt.s32.totalorder %v474_v40, 0 }
  0x61   : > { %v237_v41 = vor.u32 %v236_v34, %v235_v25  ;;  %v240_v42 = vor.u32 %v239_v36, %v238_v27  ;;  %v476_v53 = vsel %vm475_vm5, %v474_v40, 0  ;;  %v512_v31 = vshll.u32 %v472_v2, 8 }
  0x62   : > { %v245_v43 = vsel %vm241_vm1, %v225_v30, %v228_v37  ;;  %v246_v44 = vsel %vm244_vm2, %v234_v39, 2102212464  ;;  %v249_v45 = vsel %vm241_vm1, %v228_v37, %v231_v38  ;;  %v253_v46 = vsel %vm241_vm1, %v231_v38, %v234_v39 }
  0x63   : > { %v247_v47 = vsel %vm243_vm4, %v231_v38, %v246_v44  ;;  %v250_v48 = vsel %vm244_vm2, %v237_v41, 920167782  ;;  %v254_v49 = vsel %vm244_vm2, %v240_v42, 1326507024  ;;  %v477_v57 = vshrl.u32 %v476_v53, 5 }
  0x64   : > { %v251_v50 = vsel %vm243_vm4, %v234_v39, %v250_v48  ;;  %v255_v51 = vsel %vm243_vm4, %v237_v41, %v254_v49  ;;  %v248_v54 = vsel %vm242_vm3, %v245_v43, %v247_v47  ;;  %v478_v62 = vand.u32 31, %v476_v53 }
  0x65   : > { %v252_v55 = vsel %vm242_vm3, %v249_v45, %v251_v50  ;;  %v256_v56 = vsel %vm242_vm3, %v253_v46, %v255_v51  ;;  %v264_v63 = vmul.u32 %v257_v28, %v248_v54  ;;  %vm496_vm6 = vcmp.lt.s32.totalorder %v477_v57, 1 }
  0x66   : > { %v2967_v58 = vmul.u32.u64.low %v257_v28, %v256_v56  ;;  %v2968_v59 = vmul.u32.u64.high %v257_v28, %v256_v56, %v2967_v58  ;;  %v2970_v60 = vmul.u32.u64.low %v257_v28, %v252_v55  ;;  %v2971_v61 = vmul.u32.u64.high %v257_v28, %v252_v55, %v2970_v60 }
  0x67   : > { %v479_v4 = vsub.s32 32, %v478_v62  ;;  %v481_v5 = vshll.u32 %v2735_v18, %v478_v62  ;;  %v484_v6 = vshll.u32 %v2736_v20, %v478_v62  ;;  %v487_v7 = vshll.u32 %v2737_v22, %v478_v62 }
  0x68   : > { %vm266_vm7 = vc.u32 %v2968_v59, %v2970_v60  ;;  %v267_v9 = vadd.s32 1, %v2971_v61  ;;  %v490_v10 = vshll.u32 %v2738_v24, %v478_v62  ;;  %vm499_vm8 = vcmp.lt.s32.totalorder %v477_v57, 4 }
  0x69   : > { %v480_v11 = vshrl.u32 %v2735_v18, %v479_v4  ;;  %v482_v12 = vshrl.u32 %v2736_v20, %v479_v4  ;;  %v485_v13 = vshrl.u32 %v2737_v22, %v479_v4  ;;  %v488_v14 = vshrl.u32 %v2738_v24, %v479_v4 }
  0x6a   : > { %v268_v15 = vsel %vm266_vm7, %v267_v9, %v2971_v61  ;;  %v491_v16 = vshrl.u32 %v2739_v26, %v479_v4  ;;  %v493_v17 = vshll.u32 %v2739_v26, %v478_v62  ;;  %v494_v19 = vshrl.u32 %v2740_v35, %v479_v4 }
  0x6b   : > { %v269_v21 = vadd.s32 %v268_v15, %v264_v63  ;;  %v483_v23 = vor.u32 %v482_v12, %v481_v5  ;;  %v486_v25 = vor.u32 %v485_v13, %v484_v6  ;;  %v489_v27 = vor.u32 %v488_v14, %v487_v7 }
  0x6c   : > { %v492_v28 = vor.u32 %v491_v16, %v490_v10  ;;  %v495_v30 = vor.u32 %v494_v19, %v493_v17  ;;  %vm498_vm9 = vcmp.lt.s32.totalorder %v477_v57, 3  ;;  %vm497_vm10 = vcmp.lt.s32.totalorder %v477_v57, 2 }
  0x6d   : > { %v270_v32 = vadd.s32 536870912, %v269_v21  ;;  %v501_v33 = vsel %vm499_vm8, %v489_v27, 2102212464  ;;  %v504_v34 = vsel %vm496_vm6, %v483_v23, %v486_v25  ;;  %v500_v36 = vsel %vm496_vm6, %v480_v11, %v483_v23 }
  0x6e   : > { %v505_v37 = vsel %vm499_vm8, %v492_v28, 920167782  ;;  %v508_v38 = vsel %vm496_vm6, %v486_v25, %v489_v27  ;;  %v509_v39 = vsel %vm499_vm8, %v495_v30, 1326507024  ;;  %v502_v41 = vsel %vm498_vm9, %v486_v25, %v501_v33 }
  0x6f   : > { %v271_v40 = vshrl.u32 %v270_v32, 30  ;;  %v506_v42 = vsel %vm498_vm9, %v489_v27, %v505_v37  ;;  %v510_v43 = vsel %vm498_vm9, %v492_v28, %v509_v39  ;;  %v503_v49 = vsel %vm497_vm10, %v500_v36, %v502_v41 }
  0x70   : > { %v507_v44 = vsel %vm497_vm10, %v504_v34, %v506_v42  ;;  %v511_v45 = vsel %vm497_vm10, %v508_v38, %v510_v43  ;;  %v519_v54 = vmul.u32 %v512_v31, %v503_v49  ;;  %v265_v2 = vadd.s32 %v2970_v60, %v2968_v59 }
  0x71   : > { %v272_v46 = vshll.u32 %v271_v40, 30  ;;  %v2993_v47 = vmul.u32.u64.low %v512_v31, %v511_v45  ;;  %v2994_v48 = vmul.u32.u64.high %v512_v31, %v511_v45, %v2993_v47  ;;  %vm3025_vm1 = vcmp.le.f32.partialorder %v464_v29, 0.7853982 }
  0x72   : > { %v2996_v50 = vmul.u32.u64.low %v512_v31, %v507_v44  ;;  %v2997_v51 = vmul.u32.u64.high %v512_v31, %v507_v44, %v2996_v50  ;;  %v295_v31 = vsub.s32 4, %v271_v40  ;;  %vm301_vm8 = vweird.f32 %v2936_v0 }
  0x73   : > { %v273_v52 = vsub.s32 %v269_v21, %v272_v46  ;;  %v438_v27 = vmul.f32 0.05, %v2939_v1  ;;  %vm556_vm10 = vweird.f32 %v2947_v8 }
  0x74   : > { %vm521_vm11 = vc.u32 %v2994_v48, %v2996_v50  ;;  %v522_v55 = vadd.s32 1, %v2997_v51  ;;  %v520_v30 = vadd.s32 %v2996_v50, %v2994_v48  ;;  %v296_v41 = vsel %vm211_vm13, %v295_v31, %v271_v40  ;;  %v3020_v50 = vld [vmem:[%s2921_s3 + $0x10] sm:$0xff] }
  0x75   : > { %v275_v53 = vsub.s32 0, %v273_v52  ;;  %v298_v44 = vsel %vm3009_vm14, 0, %v296_v41 }
  0x76   : > { %v523_v57 = vsel %vm521_vm11, %v522_v55, %v2997_v51  ;;  %v405_v47 = vadd.s32 3, %v298_v44  ;;  %v302_v51 = vand.u32 3, %v298_v44 }
  0x77   : > { %v2377_v56 = vmin.u32 %v275_v53, %v273_v52  ;;  %v524_v61 = vadd.s32 %v523_v57, %v519_v54  ;;  %v425_v54 = vmul.f32 2.0, %v3020_v50 }
  0x78   : > { %vm307_vm2 = vcmp.eq.s32.totalorder %v302_v51, 2  ;;  %vm304_vm4 = vcmp.eq.s32.totalorder %v302_v51, 0  ;;  %vm303_vm6 = vcmp.lt.s32.totalorder %v302_v51, 2 }
  0x79   : > { %v277_v58 = vclz %v2377_v56  ;;  %v525_v63 = vadd.s32 536870912, %v524_v61 }
  0x7b   : > { %v2378_v62 = vadd.s32 4294967294, %v277_v58  ;;  %v3003_v4 = vshrl.u32 %v525_v63, 30 }
  0x7d   : > { %vm2379_vm12 = vcmp.lt.s32.totalorder %v2378_v62, 0  ;;  %v527_v10 = vshll.u32 %v3003_v4, 30  ;;  %v550_v57 = vsub.s32 4, %v3003_v4 }
  0x7e   : > { %v280_v5 = vsel %vm2379_vm12, 0, %v2378_v62 }
  0x7f   : > { %v281_v6 = vsub.s32 32, %v280_v5  ;;  %v282_v7 = vshll.u32 %v273_v52, %v280_v5  ;;  %v285_v9 = vsub.s32 4294967266, %v280_v5  ;;  %v528_v13 = vsub.s32 %v524_v61, %v527_v10 }
  0x80   : > { %v406_v52 = vand.u32 3, %v405_v47  ;;  %v424_v5 = vsub.f32 0.0, %v2939_v1  ;;  %v551_v10 = vsel %vm466_vm0, %v550_v57, %v3003_v4  ;;  %v432_v4 = vmul.f32 0.025, %v2939_v1 }
  0x81   : > { %v283_v11 = vshrl.u32 %v265_v2, %v281_v6  ;;  %v286_v12 = vadd.s32 127, %v285_v9  ;;  %v530_v16 = vsub.s32 0, %v528_v13  ;;  %v426_v9 = vadd.f32 %v2939_v1, %v425_v54 }
  0x82   : > { %vm411_vm3 = vcmp.eq.s32.totalorder %v406_v52, 2  ;;  %vm408_vm5 = vcmp.eq.s32.totalorder %v406_v52, 0  ;;  %vm407_vm7 = vcmp.lt.s32.totalorder %v406_v52, 2 }
  0x83   : > { %v284_v14 = vor.u32 %v283_v11, %v282_v7  ;;  %v287_v15 = vshll.u32 %v286_v12, 23  ;;  %v2387_v21 = vmin.u32 %v530_v16, %v528_v13 }
  0x85   : > { %v288_v17 = vor.u32 4788187, %v287_v15  ;;  %v291_v19 = vcvt.s32.f32 %v284_v14  ;;  %v532_v59 = vclz %v2387_v21  ;;  %v428_v21 = vmul.f32 %v3020_v50, %v3020_v50 }
  0x87   : > { %v289_v23 = vand.u32 2147483647, %v288_v17  ;;  %v2388_v25 = vadd.s32 4294967294, %v532_v59  ;;  %v427_v17 = vmul.f32 %v426_v9, %v424_v5 }
  0x89   : > { %v292_v60 = vmul.f32 %v291_v19, %v289_v23  ;;  %vm2389_vm15 = vcmp.lt.s32.totalorder %v2388_v25, 0  ;;  %v431_v23 = vmul.f32 0.05, %v3020_v50 }
  0x8a   : > { %v535_v32 = vsel %vm2389_vm15, 0, %v2388_v25  ;;  %v437_v25 = vmul.f32 0.025, %v3020_v50 }
  0x8b   : > { %v293_v28 = vxor.u32 2147483648, %v292_v60  ;;  %v536_v34 = vsub.s32 32, %v535_v32  ;;  %v537_v36 = vshll.u32 %v528_v13, %v535_v32  ;;  %v540_v37 = vsub.s32 4294967266, %v535_v32 }
  0x8d   : > { %v294_v33 = vsel %vm211_vm13, %v293_v28, %v292_v60  ;;  %v538_v3 = vshrl.u32 %v520_v30, %v536_v34  ;;  %v541_v39 = vadd.s32 127, %v540_v37  ;;  %v207_v30 = vld [vmem:[%s2929_s5] sm:$0xff]  ;;  %v433_v34 = vadd.f32 %v432_v4, %v431_v23 }
  0x8e   : > { %v297_v38 = vsel %vm3009_vm14, %v2936_v0, %v294_v33  ;;  %v553_v0 = vsel %vm3025_vm1, 0, %v551_v10  ;;  %v208_v33 = vld [vmem:[%s2929_s5 + $0x8] sm:$0xff]  ;;  %v439_v37 = vadd.f32 %v438_v27, %v437_v25 }
  0x8f   : > { %2556 = vcosq.f32 %v297_v38  ;;  %v539_v42 = vor.u32 %v538_v3, %v537_v36  ;;  %v542_v43 = vshll.u32 %v541_v39, 23  ;;  %v557_v59 = vand.u32 3, %v553_v0 }
  0x90   : > { %2558 = vsinq.f32 %v297_v38  ;;  %v660_v41 = vadd.s32 3, %v553_v0 }
  0x91   : > { %v543_v45 = vor.u32 4788187, %v542_v43  ;;  %v546_v46 = vcvt.s32.f32 %v539_v42  ;;  %vm562_vm9 = vcmp.eq.s32.totalorder %v557_v59, 2  ;;  %vm559_vm11 = vcmp.eq.s32.totalorder %v557_v59, 0 }
  0x92   : > { %vm558_vm12 = vcmp.lt.s32.totalorder %v557_v59, 2  ;;  %v661_v51 = vand.u32 3, %v660_v41 }
  0x93   : > { %v544_v48 = vand.u32 2147483647, %v543_v45 }
  0x94   : > { %vm663_vm13 = vcmp.eq.s32.totalorder %v661_v51, 0  ;;  %vm666_vm14 = vcmp.eq.s32.totalorder %v661_v51, 2  ;;  %vm662_vm15 = vcmp.lt.s32.totalorder %v661_v51, 2 }
  0x95   : > { %v547_v49 = vmul.f32 %v546_v46, %v544_v48 }
  0x97   : > { %v548_v53 = vxor.u32 2147483648, %v547_v49 }
  0x99   : > { %v549_v55 = vsel %vm466_vm0, %v548_v53, %v547_v49 }
  0x9a   : > { %v552_v58 = vsel %vm3025_vm1, %v2947_v8, %v549_v55 }
  0x9b   : > { %2560 = vcosq.f32 %v552_v58 }
  0x9c   : > { %v2557_v56 = vpop.eup %2556  ;;  %2562 = vsinq.f32 %v552_v58 }
  0x9d   : > { %v2559_v61 = vpop.eup %2558  ;;  %v308_v29 = vxor.u32 2147483648, %v2557_v56 }
  0x9e   : > { %v305_v62 = vxor.u32 2147483648, %v2559_v61 }
  0x9f   : > { %v309_v63 = vsel %vm307_vm2, %v308_v29, %v2559_v61  ;;  %v413_v2 = vsel %vm411_vm3, %v308_v29, %v2559_v61 }
  0xa0   : > { %v306_v6 = vsel %vm304_vm4, %v2557_v56, %v305_v62  ;;  %v410_v7 = vsel %vm408_vm5, %v2557_v56, %v305_v62 }
  0xa1   : > { %v310_v11 = vsel %vm303_vm6, %v306_v6, %v309_v63  ;;  %v414_v12 = vsel %vm407_vm7, %v410_v7, %v413_v2 }
  0xa2   : > { %v311_v13 = vsel %vm301_vm8, nan, %v310_v11  ;;  %v415_v14 = vsel %vm301_vm8, nan, %v414_v12 }
  0xa3   : > { %v416_v15 = vmul.f32 0.048, %v311_v13  ;;  %v417_v16 = vmul.f32 0.048, %v415_v14 }
  0xa5   : > { %v418_v19 = vmul.f32 %v416_v15, %v416_v15  ;;  %v429_v28 = vmul.f32 %v427_v17, %v417_v16  ;;  %v435_v31 = vmul.f32 %v428_v21, %v417_v16  ;;  %v420_v42 = vadd.f32 0.045, %v416_v15 }
  0xa6   : > { %v422_v43 = vmul.f32 2.0, %v416_v15 }
  0xa7   : > { %v419_v60 = vsub.f32 0.005625, %v418_v19  ;;  %v430_v3 = vsub.f32 %v207_v30, %v429_v28  ;;  %v436_v44 = vsub.f32 %v208_v33, %v435_v31  ;;  %v421_v52 = vsub.f32 0.0, %v420_v42 }
  0xa8   : > { %v2561_v32 = vpop.eup %2560  ;;  %v423_v40 = vadd.f32 0.17, %v422_v43 }
  0xa9   : > { %2564 = vrcp.f32 %v419_v60  ;;  %v2563_v36 = vpop.eup %2562  ;;  %v563_v38 = vxor.u32 2147483648, %v2561_v32  ;;  %v434_v48 = vsub.f32 %v430_v3, %v433_v34  ;;  %v440_v53 = vsub.f32 %v436_v44, %v439_v37  ;;  %v2384_v3 = vld [vmem:[%s2929_s5 + $0x10] sm:$0xff] }
  0xaa   : > { %v560_v39 = vxor.u32 2147483648, %v2563_v36 }
  0xab   : > { %v564_v45 = vsel %vm562_vm9, %v563_v38, %v2563_v36  ;;  %v445_v56 = vmul.f32 0.045, %v434_v48  ;;  %v446_v57 = vmul.f32 %v440_v53, %v421_v52  ;;  %v449_v58 = vmul.f32 %v434_v48, %v421_v52 }
  0xac   : > { %v561_v46 = vsel %vm559_vm11, %v2561_v32, %v560_v39  ;;  %v450_v61 = vmul.f32 %v440_v53, %v423_v40  ;;  %v665_v2 = vsel %vm663_vm13, %v2561_v32, %v560_v39  ;;  %v668_v5 = vsel %vm666_vm14, %v563_v38, %v2563_v36 }
  0xad   : > { %v565_v47 = vsel %vm558_vm12, %v561_v46, %v564_v45  ;;  %v447_v7 = vadd.f32 %v446_v57, %v445_v56  ;;  %v669_v11 = vsel %vm662_vm15, %v665_v2, %v668_v5 }
  0xae   : > { %v566_v49 = vsel %vm556_vm10, nan, %v565_v47  ;;  %v451_v9 = vadd.f32 %v450_v61, %v449_v58  ;;  %v670_v14 = vsel %vm556_vm10, nan, %v669_v11 }
  0xaf   : > { %v671_v54 = vmul.f32 0.048, %v566_v49  ;;  %v672_v19 = vmul.f32 0.048, %v670_v14 }
  0xb1   : > { %v673_v55 = vmul.f32 %v671_v54, %v671_v54  ;;  %v675_v21 = vadd.f32 0.045, %v671_v54  ;;  %v677_v25 = vmul.f32 2.0, %v671_v54 }
  0xb3   : > { %v674_v29 = vsub.f32 0.005625, %v673_v55  ;;  %v676_v39 = vsub.f32 0.0, %v675_v21  ;;  %v678_v41 = vadd.f32 0.17, %v677_v25 }
  0xb5   : > { %2566 = vrcp.f32 %v674_v29 }
  0xb6   : > { %v2565_v62 = vpop.eup %2564 }
  0xb7   : > { %v442_v63 = vmul.f32 %v2565_v62, %v419_v60  ;;  %v2385_v60 = vld [vmem:[%s2929_s5 + $0x18] sm:$0xff] }
  0xb9   : > { %v443_v6 = vsub.f32 2.0, %v442_v63 }
  0xbb   : > { %v444_v10 = vmul.f32 %v2565_v62, %v443_v6 }
  0xbd   : > { %v448_v12 = vmul.f32 %v447_v7, %v444_v10  ;;  %v452_v13 = vmul.f32 %v451_v9, %v444_v10 }
  0xbf   : > { %v457_v15 = vmul.f32 0.125, %v448_v12  ;;  %v459_v0 = vmul.f32 0.125, %v452_v13 }
  0xc1   : > { %v3058_v16 = vadd.f32 %v3020_v50, %v457_v15  ;;  %v3061_v17 = vadd.f32 %v2939_v1, %v459_v0 }
  0xc2   : > { %v2567_v33 = vpop.eup %2566 }
  0xc3   : > { %v679_v23 = vsub.f32 0.0, %v3061_v17  ;;  %v680_v4 = vmul.f32 2.0, %v3058_v16  ;;  %v683_v59 = vmul.f32 %v3058_v16, %v3058_v16  ;;  %v692_v27 = vmul.f32 0.025, %v3058_v16 }
  0xc4   : > { %v693_v28 = vmul.f32 0.05, %v3061_v17  ;;  %v686_v1 = vmul.f32 0.05, %v3058_v16  ;;  %v687_v31 = vmul.f32 0.025, %v3061_v17  ;;  %v697_v46 = vmul.f32 %v2567_v33, %v674_v29 }
  0xc5   : > { %v681_v30 = vadd.f32 %v680_v4, %v3061_v17  ;;  %v690_v32 = vmul.f32 %v683_v59, %v672_v19  ;;  %v710_v36 = vmul.f32 0.125, %v3061_v17 }
  0xc6   : > { %v694_v34 = vadd.f32 %v693_v28, %v692_v27  ;;  %v688_v44 = vadd.f32 %v687_v31, %v686_v1  ;;  %v698_v53 = vsub.f32 2.0, %v697_v46 }
  0xc7   : > { %v682_v37 = vmul.f32 %v681_v30, %v679_v23  ;;  %v691_v38 = vsub.f32 %v2385_v60, %v690_v32  ;;  %v3076_v42 = vadd.f32 %v710_v36, %v2947_v8 }
  0xc8   : > { %v699_v61 = vmul.f32 %v2567_v33, %v698_v53 }
  0xc9   : > { %v684_v43 = vmul.f32 %v682_v37, %v672_v19  ;;  %v695_v45 = vsub.f32 %v691_v38, %v694_v34  ;;  %v722_v47 = vand.u32 2139095040, %v3076_v42  ;;  %v719_v51 = vand.u32 2147483647, %v3076_v42 }
  0xca   : > { %vm721_vm13 = vcmp.lt.s32.totalorder %v3076_v42, 0  ;;  %vm811_vm15 = vweird.f32 %v3076_v42 }
  0xcb   : > { %v685_v48 = vsub.f32 %v2384_v3, %v684_v43  ;;  %v701_v49 = vmul.f32 %v695_v45, %v676_v39  ;;  %v723_v52 = vshrl.u32 %v722_v47, 23  ;;  %v705_v54 = vmul.f32 %v695_v45, %v678_v41 }
  0xcc   : > { %v726_v8 = vand.u32 8388607, %v719_v51  ;;  %vm720_vm14 = vcmp.le.f32.partialorder %v719_v51, 0.7853982 }
  0xcd   : > { %v689_v40 = vsub.f32 %v685_v48, %v688_v44  ;;  %v2396_v55 = vadd.s32 4294967169, %v723_v52 }
  0xce   : > { %v727_v2 = vor.u32 8388608, %v726_v8 }
  0xcf   : > { %v700_v56 = vmul.f32 0.045, %v689_v40  ;;  %v704_v57 = vmul.f32 %v689_v40, %v676_v39  ;;  %v729_v58 = vadd.s32 1, %v2396_v55 }
  0xd0   : > { %v767_v21 = vshll.u32 %v727_v2, 8 }
  0xd1   : > { %v702_v62 = vadd.f32 %v701_v49, %v700_v56  ;;  %v706_v29 = vadd.f32 %v705_v54, %v704_v57  ;;  %vm730_vm0 = vcmp.gt.s32.totalorder %v729_v58, 0 }
  0xd2   : > { %v731_v5 = vsel %vm730_vm0, %v729_v58, 0 }
  0xd3   : > { %v703_v63 = vmul.f32 %v702_v62, %v699_v61  ;;  %v733_v6 = vand.u32 31, %v731_v5  ;;  %v707_v7 = vmul.f32 %v706_v29, %v699_v61  ;;  %v732_v10 = vshrl.u32 %v731_v5, 5 }
  0xd5   : > { %v712_v9 = vmul.f32 0.125, %v703_v63  ;;  %v734_v11 = vsub.s32 32, %v733_v6  ;;  %v736_v12 = vshll.u32 %v2735_v18, %v733_v6  ;;  %v739_v13 = vshll.u32 %v2736_v20, %v733_v6 }
  0xd6   : > { %v742_v14 = vshll.u32 %v2737_v22, %v733_v6  ;;  %v745_v0 = vshll.u32 %v2738_v24, %v733_v6  ;;  %v748_v19 = vshll.u32 %v2739_v26, %v733_v6  ;;  %v714_v25 = vmul.f32 0.125, %v707_v7 }
  0xd7   : > { %v3086_v15 = vadd.f32 %v712_v9, %v3058_v16  ;;  %v735_v23 = vshrl.u32 %v2735_v18, %v734_v11  ;;  %v737_v4 = vshrl.u32 %v2736_v20, %v734_v11  ;;  %v740_v59 = vshrl.u32 %v2737_v22, %v734_v11 }
  0xd8   : > { %v743_v60 = vshrl.u32 %v2738_v24, %v734_v11  ;;  %v746_v27 = vshrl.u32 %v2739_v26, %v734_v11  ;;  %v749_v28 = vshrl.u32 %v2740_v35, %v734_v11  ;;  %vm751_vm1 = vcmp.lt.s32.totalorder %v732_v10, 1 }
  0xd9   : > { %v738_v30 = vor.u32 %v737_v4, %v736_v12  ;;  %v741_v1 = vor.u32 %v740_v59, %v739_v13  ;;  %vm752_vm2 = vcmp.lt.s32.totalorder %v732_v10, 2  ;;  %vm753_vm3 = vcmp.lt.s32.totalorder %v732_v10, 3 }
  0xda   : > { %v744_v31 = vor.u32 %v743_v60, %v742_v14  ;;  %v747_v32 = vor.u32 %v746_v27, %v745_v0  ;;  %v750_v33 = vor.u32 %v749_v28, %v748_v19  ;;  %vm754_vm4 = vcmp.lt.s32.totalorder %v732_v10, 4 }
  0xdb   : > { %v755_v34 = vsel %vm751_vm1, %v735_v23, %v738_v30  ;;  %v759_v37 = vsel %vm751_vm1, %v738_v30, %v741_v1  ;;  %v3097_v43 = vadd.f32 %v714_v25, %v3061_v17 }
  0xdc   : > { %v756_v36 = vsel %vm754_vm4, %v744_v31, 2102212464  ;;  %v763_v38 = vsel %vm751_vm1, %v741_v1, %v744_v31  ;;  %v760_v39 = vsel %vm754_vm4, %v747_v32, 920167782  ;;  %v764_v41 = vsel %vm754_vm4, %v750_v33, 1326507024 }
  0xdd   : > { %v757_v3 = vsel %vm753_vm3, %v741_v1, %v756_v36  ;;  %v761_v44 = vsel %vm753_vm3, %v744_v31, %v760_v39  ;;  %v765_v45 = vsel %vm753_vm3, %v747_v32, %v764_v41  ;;  %v965_v54 = vmul.f32 0.125, %v3097_v43 }
  0xde   : > { %v758_v46 = vsel %vm752_vm2, %v755_v34, %v757_v3  ;;  %v762_v47 = vsel %vm752_vm2, %v759_v37, %v761_v44  ;;  %v766_v48 = vsel %vm752_vm2, %v763_v38, %v765_v45 }
  0xdf   : > { %v3102_v49 = vmul.u32.u64.low %v767_v21, %v766_v48  ;;  %v3103_v52 = vmul.u32.u64.high %v767_v21, %v766_v48, %v3102_v49  ;;  %v3105_v40 = vmul.u32.u64.low %v767_v21, %v762_v47  ;;  %v3106_v53 = vmul.u32.u64.high %v767_v21, %v762_v47, %v3105_v40 }
  0xe0   : > { %v774_v55 = vmul.u32 %v767_v21, %v758_v46  ;;  %v3112_v56 = vadd.f32 %v965_v54, %v3076_v42 }
  0xe1   : > { %vm776_vm5 = vc.u32 %v3103_v52, %v3105_v40  ;;  %v777_v17 = vadd.s32 1, %v3106_v53  ;;  %v775_v0 = vadd.s32 %v3105_v40, %v3103_v52 }
  0xe2   : > { %v977_v58 = vand.u32 2139095040, %v3112_v56  ;;  %v974_v29 = vand.u32 2147483647, %v3112_v56 }
  0xe3   : > { %v778_v57 = vsel %vm776_vm5, %v777_v17, %v3106_v53 }
  0xe4   : > { %v779_v8 = vadd.s32 %v778_v57, %v774_v55  ;;  %v978_v62 = vshrl.u32 %v977_v58, 23  ;;  %v981_v7 = vand.u32 8388607, %v974_v29 }
  0xe6   : > { %v780_v61 = vadd.s32 536870912, %v779_v8  ;;  %v2406_v2 = vadd.s32 4294967169, %v978_v62  ;;  %v982_v12 = vor.u32 8388608, %v981_v7 }
  0xe8   : > { %v3117_v63 = vshrl.u32 %v780_v61, 30  ;;  %v984_v6 = vadd.s32 1, %v2406_v2  ;;  %v1022_v30 = vshll.u32 %v982_v12, 8 }
  0xea   : > { %v782_v5 = vshll.u32 %v3117_v63, 30  ;;  %vm985_vm6 = vcmp.gt.s32.totalorder %v984_v6, 0 }
  0xeb   : > { %v986_v10 = vsel %vm985_vm6, %v984_v6, 0 }
  0xec   : > { %v783_v9 = vsub.s32 %v779_v8, %v782_v5  ;;  %v988_v13 = vand.u32 31, %v986_v10  ;;  %v987_v19 = vshrl.u32 %v986_v10, 5 }
  0xee   : > { %v785_v11 = vsub.s32 0, %v783_v9  ;;  %v989_v21 = vsub.s32 32, %v988_v13  ;;  %v991_v4 = vshll.u32 %v2735_v18, %v988_v13  ;;  %v994_v59 = vshll.u32 %v2736_v20, %v988_v13 }
  0xef   : > { %v997_v60 = vshll.u32 %v2737_v22, %v988_v13  ;;  %v1000_v27 = vshll.u32 %v2738_v24, %v988_v13  ;;  %v1003_v28 = vshll.u32 %v2739_v26, %v988_v13  ;;  %vm1006_vm7 = vcmp.lt.s32.totalorder %v987_v19, 1 }
  0xf0   : > { %v2397_v14 = vmin.u32 %v785_v11, %v783_v9  ;;  %v990_v25 = vshrl.u32 %v2735_v18, %v989_v21  ;;  %v992_v31 = vshrl.u32 %v2736_v20, %v989_v21  ;;  %v995_v32 = vshrl.u32 %v2737_v22, %v989_v21 }
  0xf1   : > { %v998_v33 = vshrl.u32 %v2738_v24, %v989_v21  ;;  %v1001_v34 = vshrl.u32 %v2739_v26, %v989_v21  ;;  %v1004_v36 = vshrl.u32 %v2740_v35, %v989_v21  ;;  %vm1007_vm8 = vcmp.lt.s32.totalorder %v987_v19, 2 }
  0xf2   : > { %v787_v23 = vclz %v2397_v14  ;;  %v993_v37 = vor.u32 %v992_v31, %v991_v4  ;;  %v996_v38 = vor.u32 %v995_v32, %v994_v59  ;;  %vm1008_vm10 = vcmp.lt.s32.totalorder %v987_v19, 3 }
  0xf3   : > { %v999_v3 = vor.u32 %v998_v33, %v997_v60  ;;  %v1002_v41 = vor.u32 %v1001_v34, %v1000_v27  ;;  %v1005_v44 = vor.u32 %v1004_v36, %v1003_v28  ;;  %vm1009_vm11 = vcmp.lt.s32.totalorder %v987_v19, 4 }
  0xf4   : > { %v2398_v1 = vadd.s32 4294967294, %v787_v23  ;;  %v1010_v48 = vsel %vm1006_vm7, %v990_v25, %v993_v37  ;;  %v1014_v52 = vsel %vm1006_vm7, %v993_v37, %v996_v38  ;;  %v805_v60 = vsub.s32 4, %v3117_v63 }
  0xf5   : > { %v1011_v49 = vsel %vm1009_vm11, %v999_v3, 2102212464  ;;  %v1015_v40 = vsel %vm1009_vm11, %v1002_v41, 920167782  ;;  %v1018_v8 = vsel %vm1006_vm7, %v996_v38, %v999_v3  ;;  %v1019_v58 = vsel %vm1009_vm11, %v1005_v44, 1326507024 }
  0xf6   : > { %vm2399_vm9 = vcmp.lt.s32.totalorder %v2398_v1, 0  ;;  %v1012_v55 = vsel %vm1008_vm10, %v996_v38, %v1011_v49  ;;  %v1016_v17 = vsel %vm1008_vm10, %v999_v3, %v1015_v40  ;;  %v1020_v2 = vsel %vm1008_vm10, %v1002_v41, %v1019_v58 }
  0xf7   : > { %v790_v39 = vsel %vm2399_vm9, 0, %v2398_v1  ;;  %v1017_v57 = vsel %vm1007_vm8, %v1014_v52, %v1016_v17  ;;  %v1013_v5 = vsel %vm1007_vm8, %v1010_v48, %v1012_v55  ;;  %v1021_v6 = vsel %vm1007_vm8, %v1018_v8, %v1020_v2 }
  0xf8   : > { %v791_v45 = vsub.s32 32, %v790_v39  ;;  %v792_v46 = vshll.u32 %v783_v9, %v790_v39  ;;  %v795_v47 = vsub.s32 4294967266, %v790_v39  ;;  %v806_v1 = vsel %vm721_vm13, %v805_v60, %v3117_v63 }
  0xf9   : > { %v3143_v7 = vmul.u32.u64.low %v1022_v30, %v1017_v57  ;;  %v3144_v9 = vmul.u32.u64.high %v1022_v30, %v1017_v57, %v3143_v7  ;;  %v3146_v12 = vmul.u32.u64.low %v1022_v30, %v1021_v6  ;;  %v3147_v13 = vmul.u32.u64.high %v1022_v30, %v1021_v6, %v3146_v12 }
  0xfa   : > { %v793_v53 = vshrl.u32 %v775_v0, %v791_v45  ;;  %v796_v54 = vadd.s32 127, %v795_v47  ;;  %v1029_v0 = vmul.u32 %v1022_v30, %v1013_v5  ;;  %v808_v32 = vsel %vm720_vm14, 0, %v806_v1  ;;  %v2395_v1 = vld [vmem:[%s2929_s5 + $0x28] sm:$0xff] }
  0xfb   : > { %v1032_v21 = vadd.s32 1, %v3144_v9  ;;  %vm1031_vm12 = vc.u32 %v3147_v13, %v3143_v7  ;;  %v915_v34 = vadd.s32 3, %v808_v32  ;;  %v812_v37 = vand.u32 3, %v808_v32 }
  0xfc   : > { %v794_v61 = vor.u32 %v793_v53, %v792_v46  ;;  %v797_v62 = vshll.u32 %v796_v54, 23  ;;  %v935_v63 = vmul.f32 2.0, %v3086_v15  ;;  %v1030_v46 = vadd.s32 %v3143_v7, %v3147_v13 }
  0xfd   : > { %v1033_v19 = vsel %vm1031_vm12, %v1032_v21, %v3144_v9  ;;  %v916_v38 = vand.u32 3, %v915_v34  ;;  %vm814_vm0 = vcmp.eq.s32.totalorder %v812_v37, 0  ;;  %vm817_vm1 = vcmp.eq.s32.totalorder %v812_v37, 2 }
  0xfe   : > { %v798_v10 = vor.u32 4788187, %v797_v62  ;;  %v801_v11 = vcvt.s32.f32 %v794_v61  ;;  %v1034_v59 = vadd.s32 %v1033_v19, %v1029_v0  ;;  %vm813_vm5 = vcmp.lt.s32.totalorder %v812_v37, 2 }
  0xff   : > { %vm921_vm2 = vcmp.eq.s32.totalorder %v916_v38, 2  ;;  %vm918_vm3 = vcmp.eq.s32.totalorder %v916_v38, 0  ;;  %vm917_vm6 = vcmp.lt.s32.totalorder %v916_v38, 2  ;;  %v934_v17 = vsub.f32 0.0, %v3097_v43 }
 0x100   : > { %v799_v14 = vand.u32 2147483647, %v798_v10  ;;  %v1035_v27 = vadd.s32 536870912, %v1034_v59  ;;  %v936_v61 = vadd.f32 %v935_v63, %v3097_v43  ;;  %v941_v19 = vmul.f32 0.05, %v3086_v15 }
 0x101   : > { %vm976_vm7 = vcmp.lt.s32.totalorder %v3112_v56, 0  ;;  %vm3182_vm8 = vcmp.le.f32.partialorder %v974_v29, 0.7853982 }
 0x102   : > { %v802_v23 = vmul.f32 %v801_v11, %v799_v14  ;;  %v3157_v30 = vshrl.u32 %v1035_v27, 30  ;;  %v937_v13 = vmul.f32 %v936_v61, %v934_v17  ;;  %v938_v14 = vmul.f32 %v3086_v15, %v3086_v15 }
 0x103   : > { %v948_v27 = vmul.f32 0.05, %v3097_v43 }
 0x104   : > { %v803_v4 = vxor.u32 2147483648, %v802_v23  ;;  %v1037_v31 = vshll.u32 %v3157_v30, 30 }
 0x106   : > { %v804_v25 = vsel %vm721_vm13, %v803_v4, %v802_v23  ;;  %v1038_v33 = vsub.s32 %v1034_v59, %v1037_v31  ;;  %v947_v4 = vmul.f32 0.025, %v3086_v15 }
 0x107   : > { %v807_v28 = vsel %vm720_vm14, %v3076_v42, %v804_v25  ;;  %v942_v42 = vmul.f32 0.025, %v3097_v43 }
 0x108   : > { %2568 = vcosq.f32 %v807_v28  ;;  %v1040_v51 = vsub.s32 0, %v1038_v33 }
 0x109   : > { %2570 = vsinq.f32 %v807_v28  ;;  %v2394_v28 = vld [vmem:[%s2929_s5 + $0x20] sm:$0xff]  ;;  %v943_v32 = vadd.f32 %v942_v42, %v941_v19 }
 0x10a   : > { %v2407_v36 = vmin.u32 %v1040_v51, %v1038_v33 }
 0x10c   : > { %v1042_v3 = vclz %v2407_v36  ;;  %v1060_v36 = vsub.s32 4, %v3157_v30 }
 0x10e   : > { %v2408_v39 = vadd.s32 4294967294, %v1042_v3 }
 0x110   : > { %vm2409_vm4 = vcmp.lt.s32.totalorder %v2408_v39, 0 }
 0x111   : > { %v1045_v48 = vsel %vm2409_vm4, 0, %v2408_v39  ;;  %v949_v39 = vadd.f32 %v948_v27, %v947_v4 }
 0x112   : > { %v1046_v40 = vsub.s32 32, %v1045_v48  ;;  %v1047_v53 = vshll.u32 %v1038_v33, %v1045_v48  ;;  %v1050_v57 = vsub.s32 4294967266, %v1045_v48 }
 0x114   : > { %v1048_v62 = vshrl.u32 %v1030_v46, %v1046_v40  ;;  %v1051_v6 = vadd.s32 127, %v1050_v57  ;;  %v200_v40 = vld [vmem:[%s2921_s3] sm:$0xff] }
 0x115   : > { %v2569_v41 = vpop.eup %2568 }
 0x116   : > { %v2571_v44 = vpop.eup %2570  ;;  %v818_v45 = vxor.u32 2147483648, %v2569_v41  ;;  %v1049_v9 = vor.u32 %v1048_v62, %v1047_v53  ;;  %v1052_v10 = vshll.u32 %v1051_v6, 23 }
 0x117   : > { %v815_v47 = vxor.u32 2147483648, %v2571_v44 }
 0x118   : > { %v819_v49 = vsel %vm817_vm1, %v818_v45, %v2571_v44  ;;  %v923_v52 = vsel %vm921_vm2, %v818_v45, %v2571_v44  ;;  %v1053_v0 = vor.u32 4788187, %v1052_v10  ;;  %v1056_v21 = vcvt.s32.f32 %v1049_v9 }
 0x119   : > { %v816_v54 = vsel %vm814_vm0, %v2569_v41, %v815_v47  ;;  %v920_v55 = vsel %vm918_vm3, %v2569_v41, %v815_v47  ;;  %v1061_v45 = vsel %vm976_vm7, %v1060_v36, %v3157_v30  ;;  %v708_v30 = vmul.f32 0.125, %v3058_v16 }
 0x11a   : > { %v820_v8 = vsel %vm813_vm5, %v816_v54, %v819_v49  ;;  %v924_v58 = vsel %vm917_vm6, %v920_v55, %v923_v52  ;;  %v1054_v59 = vand.u32 2147483647, %v1053_v0  ;;  %v1063_v48 = vsel %vm3182_vm8, 0, %v1061_v45 }
 0x11b   : > { %v821_v2 = vsel %vm811_vm15, nan, %v820_v8  ;;  %v925_v5 = vsel %vm811_vm15, nan, %v924_v58  ;;  %v453_v49 = vmul.f32 0.125, %v3020_v50  ;;  %v1170_v52 = vadd.s32 3, %v1063_v48 }
 0x11c   : > { %v926_v7 = vmul.f32 0.048, %v821_v2  ;;  %v927_v11 = vmul.f32 0.048, %v925_v5  ;;  %v1057_v31 = vmul.f32 %v1056_v21, %v1054_v59  ;;  %v1067_v61 = vand.u32 3, %v1063_v48 }
 0x11d   : > { %v454_v58 = vadd.f32 %v453_v49, %v200_v40  ;;  %v1171_v6 = vand.u32 3, %v1170_v52  ;;  %v963_v50 = vmul.f32 0.125, %v3086_v15  ;;  %vm1066_vm15 = vweird.f32 %v3112_v56 }
 0x11e   : > { %v928_v12 = vmul.f32 %v926_v7, %v926_v7  ;;  %v939_v60 = vmul.f32 %v937_v13, %v927_v11  ;;  %v945_v25 = vmul.f32 %v938_v14, %v927_v11  ;;  %v930_v33 = vadd.f32 0.045, %v926_v7 }
 0x11f   : > { %v1058_v51 = vxor.u32 2147483648, %v1057_v31  ;;  %v932_v37 = vmul.f32 2.0, %v926_v7  ;;  %v709_v9 = vadd.f32 %v708_v30, %v454_v58  ;;  %vm1072_vm9 = vcmp.eq.s32.totalorder %v1067_v61, 2 }
 0x120   : > { %v929_v23 = vsub.f32 0.005625, %v928_v12  ;;  %v940_v38 = vsub.f32 %v2394_v28, %v939_v60  ;;  %v946_v3 = vsub.f32 %v2395_v1, %v945_v25  ;;  %v931_v44 = vsub.f32 0.0, %v930_v33  ;;  %v2405_v1 = vld [vmem:[%s2929_s5 + $0x38] sm:$0xff] }
 0x121   : > { %v1059_v41 = vsel %vm976_vm7, %v1058_v51, %v1057_v31  ;;  %v933_v29 = vadd.f32 0.17, %v932_v37  ;;  %vm1176_vm10 = vcmp.eq.s32.totalorder %v1171_v6, 2  ;;  %vm1068_vm11 = vcmp.lt.s32.totalorder %v1067_v61, 2 }
 0x122   : > { %2572 = vrcp.f32 %v929_v23  ;;  %v1062_v63 = vsel %vm3182_vm8, %v3112_v56, %v1059_v41  ;;  %v944_v46 = vsub.f32 %v940_v38, %v943_v32  ;;  %v950_v47 = vsub.f32 %v946_v3, %v949_v39 }
 0x123   : > { %2574 = vcosq.f32 %v1062_v63  ;;  %vm1069_vm12 = vcmp.eq.s32.totalorder %v1067_v61, 0  ;;  %vm1173_vm13 = vcmp.eq.s32.totalorder %v1171_v6, 0  ;;  %vm1172_vm14 = vcmp.lt.s32.totalorder %v1171_v6, 2 }
 0x124   : > { %2576 = vsinq.f32 %v1062_v63  ;;  %v955_v53 = vmul.f32 0.045, %v944_v46  ;;  %v956_v54 = vmul.f32 %v950_v47, %v931_v44  ;;  %v959_v55 = vmul.f32 %v944_v46, %v931_v44 }
 0x125   : > { %v960_v17 = vmul.f32 %v950_v47, %v933_v29  ;;  %v964_v25 = vadd.f32 %v963_v50, %v709_v9  ;;  %v2404_v47 = vld [vmem:[%s2929_s5 + $0x30] sm:$0xff] }
 0x126   : > { %v957_v2 = vadd.f32 %v956_v54, %v955_v53 }
 0x127   : > { %v961_v5 = vadd.f32 %v960_v17, %v959_v55 }
 0x12f   : > { %v2573_v57 = vpop.eup %2572 }
 0x130   : > { %v952_v8 = vmul.f32 %v2573_v57, %v929_v23  ;;  %v2575_v10 = vpop.eup %2574 }
 0x131   : > { %v2577_v13 = vpop.eup %2576  ;;  %v1073_v14 = vxor.u32 2147483648, %v2575_v10 }
 0x132   : > { %v953_v62 = vsub.f32 2.0, %v952_v8  ;;  %v1070_v21 = vxor.u32 2147483648, %v2577_v13 }
 0x133   : > { %v1074_v23 = vsel %vm1072_vm9, %v1073_v14, %v2577_v13  ;;  %v1178_v19 = vsel %vm1176_vm10, %v1073_v14, %v2577_v13 }
 0x134   : > { %v954_v7 = vmul.f32 %v2573_v57, %v953_v62  ;;  %v1071_v59 = vsel %vm1069_vm12, %v2575_v10, %v1070_v21  ;;  %v1175_v60 = vsel %vm1173_vm13, %v2575_v10, %v1070_v21 }
 0x135   : > { %v1075_v27 = vsel %vm1068_vm11, %v1071_v59, %v1074_v23  ;;  %v1179_v28 = vsel %vm1172_vm14, %v1175_v60, %v1178_v19 }
 0x136   : > { %v958_v11 = vmul.f32 %v957_v2, %v954_v7  ;;  %v962_v12 = vmul.f32 %v961_v5, %v954_v7  ;;  %v1076_v31 = vsel %vm1066_vm15, nan, %v1075_v27  ;;  %v1180_v32 = vsel %vm1066_vm15, nan, %v1179_v28 }
 0x137   : > { %v1181_v51 = vmul.f32 0.048, %v1076_v31 }
 0x138   : > { %v967_v16 = vmul.f32 0.125, %v958_v11  ;;  %v969_v0 = vmul.f32 0.125, %v962_v12 }
 0x139   : > { %v1183_v41 = vmul.f32 %v1181_v51, %v1181_v51  ;;  %v1185_v63 = vadd.f32 0.045, %v1181_v51  ;;  %v1187_v58 = vmul.f32 2.0, %v1181_v51 }
 0x13a   : > { %v3199_v42 = vadd.f32 %v967_v16, %v3086_v15  ;;  %v3202_v4 = vadd.f32 %v969_v0, %v3097_v43  ;;  %v1182_v15 = vmul.f32 0.048, %v1180_v32 }
 0x13b   : > { %v1184_v48 = vsub.f32 0.005625, %v1183_v41  ;;  %v1186_v55 = vsub.f32 0.0, %v1185_v63  ;;  %v1188_v7 = vadd.f32 0.17, %v1187_v58 }
 0x13c   : > { %v1189_v33 = vsub.f32 0.0, %v3202_v4  ;;  %v1190_v34 = vmul.f32 2.0, %v3199_v42  ;;  %v1193_v43 = vmul.f32 %v3199_v42, %v3199_v42  ;;  %v1196_v36 = vmul.f32 0.05, %v3199_v42 }
 0x13d   : > { %v1197_v38 = vmul.f32 0.025, %v3202_v4  ;;  %v1202_v3 = vmul.f32 0.025, %v3199_v42  ;;  %v1203_v39 = vmul.f32 0.05, %v3202_v4  ;;  %2578 = vrcp.f32 %v1184_v48 }
 0x13e   : > { %v1191_v37 = vadd.f32 %v1190_v34, %v3202_v4  ;;  %v1200_v44 = vmul.f32 %v1193_v43, %v1182_v15  ;;  %v1218_v46 = vmul.f32 0.125, %v3199_v42  ;;  %v1220_v54 = vmul.f32 0.125, %v3202_v4 }
 0x13f   : > { %v1204_v29 = vadd.f32 %v1203_v39, %v1202_v3  ;;  %v1198_v40 = vadd.f32 %v1197_v38, %v1196_v36 }
 0x140   : > { %v1192_v45 = vmul.f32 %v1191_v37, %v1189_v33  ;;  %v1201_v49 = vsub.f32 %v2405_v1, %v1200_v44  ;;  %v3217_v53 = vadd.f32 %v1218_v46, %v964_v25  ;;  %v3221_v8 = vadd.f32 %v1220_v54, %v3112_v56 }
 0x142   : > { %v1194_v52 = vmul.f32 %v1192_v45, %v1182_v15  ;;  %v1205_v17 = vsub.f32 %v1201_v49, %v1204_v29  ;;  %v1232_v62 = vand.u32 2139095040, %v3221_v8  ;;  %v1229_v2 = vand.u32 2147483647, %v3221_v8 }
 0x143   : > { %vm1231_vm13 = vcmp.lt.s32.totalorder %v3221_v8, 0  ;;  %vm1321_vm15 = vweird.f32 %v3221_v8 }
 0x144   : > { %v1195_v57 = vsub.f32 %v2404_v47, %v1194_v52  ;;  %v1211_v30 = vmul.f32 %v1205_v17, %v1186_v55  ;;  %v1233_v6 = vshrl.u32 %v1232_v62, 23  ;;  %v1236_v10 = vand.u32 8388607, %v1229_v2 }
 0x145   : > { %v1215_v13 = vmul.f32 %v1205_v17, %v1188_v7  ;;  %vm1230_vm14 = vcmp.le.f32.partialorder %v1229_v2, 0.7853982 }
 0x146   : > { %v1199_v61 = vsub.f32 %v1195_v57, %v1198_v40  ;;  %v2416_v50 = vadd.s32 4294967169, %v1233_v6  ;;  %v1237_v56 = vor.u32 8388608, %v1236_v10 }
 0x148   : > { %v1210_v5 = vmul.f32 0.045, %v1199_v61  ;;  %v1239_v11 = vadd.s32 1, %v2416_v50  ;;  %v1214_v12 = vmul.f32 %v1199_v61, %v1186_v55  ;;  %v1277_v32 = vshll.u32 %v1237_v56, 8 }
 0x14a   : > { %v1212_v9 = vadd.f32 %v1211_v30, %v1210_v5  ;;  %vm1240_vm0 = vcmp.gt.s32.totalorder %v1239_v11, 0  ;;  %v2579_v16 = vpop.eup %2578  ;;  %v1216_v23 = vadd.f32 %v1215_v13, %v1214_v12 }
 0x14b   : > { %v1241_v14 = vsel %vm1240_vm0, %v1239_v11, 0  ;;  %v1207_v21 = vmul.f32 %v2579_v16, %v1184_v48 }
 0x14c   : > { %v1243_v0 = vand.u32 31, %v1241_v14  ;;  %v1242_v19 = vshrl.u32 %v1241_v14, 5 }
 0x14d   : > { %v1208_v28 = vsub.f32 2.0, %v1207_v21 }
 0x14e   : > { %v1244_v59 = vsub.s32 32, %v1243_v0  ;;  %v1246_v60 = vshll.u32 %v2735_v18, %v1243_v0  ;;  %v1249_v25 = vshll.u32 %v2736_v20, %v1243_v0  ;;  %v1252_v27 = vshll.u32 %v2737_v22, %v1243_v0 }
 0x14f   : > { %v1255_v1 = vshll.u32 %v2738_v24, %v1243_v0  ;;  %v1258_v31 = vshll.u32 %v2739_v26, %v1243_v0  ;;  %v1209_v43 = vmul.f32 %v2579_v16, %v1208_v28  ;;  %vm1261_vm1 = vcmp.lt.s32.totalorder %v1242_v19, 1 }
 0x150   : > { %v1245_v33 = vshrl.u32 %v2735_v18, %v1244_v59  ;;  %v1247_v34 = vshrl.u32 %v2736_v20, %v1244_v59  ;;  %v1250_v51 = vshrl.u32 %v2737_v22, %v1244_v59  ;;  %v1253_v15 = vshrl.u32 %v2738_v24, %v1244_v59 }
 0x151   : > { %v1256_v36 = vshrl.u32 %v2739_v26, %v1244_v59  ;;  %v1259_v37 = vshrl.u32 %v2740_v35, %v1244_v59  ;;  %vm1263_vm2 = vcmp.lt.s32.totalorder %v1242_v19, 3  ;;  %v1213_v41 = vmul.f32 %v1212_v9, %v1209_v43 }
 0x152   : > { %v1248_v38 = vor.u32 %v1247_v34, %v1246_v60  ;;  %v1251_v3 = vor.u32 %v1250_v51, %v1249_v25  ;;  %v1254_v39 = vor.u32 %v1253_v15, %v1252_v27  ;;  %v1217_v63 = vmul.f32 %v1216_v23, %v1209_v43 }
 0x153   : > { %v1257_v44 = vor.u32 %v1256_v36, %v1255_v1  ;;  %v1260_v45 = vor.u32 %v1259_v37, %v1258_v31  ;;  %vm1262_vm3 = vcmp.lt.s32.totalorder %v1242_v19, 2  ;;  %vm1264_vm4 = vcmp.lt.s32.totalorder %v1242_v19, 4 }
 0x154   : > { %v1265_v29 = vsel %vm1261_vm1, %v1245_v33, %v1248_v38  ;;  %v1269_v46 = vsel %vm1261_vm1, %v1248_v38, %v1251_v3  ;;  %v1222_v47 = vmul.f32 0.125, %v1213_v41  ;;  %v1224_v48 = vmul.f32 0.125, %v1217_v63 }
 0x155   : > { %v1266_v49 = vsel %vm1264_vm4, %v1254_v39, 2102212464  ;;  %v1270_v52 = vsel %vm1264_vm4, %v1257_v44, 920167782  ;;  %v1273_v55 = vsel %vm1261_vm1, %v1251_v3, %v1254_v39  ;;  %v1274_v17 = vsel %vm1264_vm4, %v1260_v45, 1326507024 }
 0x156   : > { %v1267_v40 = vsel %vm1263_vm2, %v1251_v3, %v1266_v49  ;;  %v1271_v54 = vsel %vm1263_vm2, %v1254_v39, %v1270_v52  ;;  %v3244_v57 = vadd.f32 %v1222_v47, %v3199_v42  ;;  %v3248_v30 = vadd.f32 %v1224_v48, %v3202_v4 }
 0x157   : > { %v1272_v58 = vsel %vm1262_vm3, %v1269_v46, %v1271_v54  ;;  %v1275_v61 = vsel %vm1263_vm2, %v1257_v44, %v1274_v17  ;;  %v1268_v6 = vsel %vm1262_vm3, %v1265_v29, %v1267_v40 }
 0x158   : > { %v3251_v62 = vmul.u32.u64.low %v1277_v32, %v1272_v58  ;;  %v3252_v5 = vmul.u32.u64.high %v1277_v32, %v1272_v58, %v3251_v62  ;;  %v1276_v7 = vsel %vm1262_vm3, %v1273_v55, %v1275_v61  ;;  %v1284_v10 = vmul.u32 %v1277_v32, %v1268_v6 }
 0x159   : > { %v3256_v9 = vmul.u32.u64.low %v1277_v32, %v1276_v7  ;;  %v3257_v50 = vmul.u32.u64.high %v1277_v32, %v1276_v7, %v3256_v9  ;;  %v1475_v11 = vmul.f32 0.125, %v3248_v30 }
 0x15a   : > { %v1287_v42 = vadd.s32 1, %v3252_v5 }
 0x15b   : > { %vm1286_vm5 = vc.u32 %v3257_v50, %v3251_v62  ;;  %v3263_v4 = vadd.f32 %v1475_v11, %v3221_v8  ;;  %v1285_v33 = vadd.s32 %v3251_v62, %v3257_v50 }
 0x15c   : > { %v1288_v12 = vsel %vm1286_vm5, %v1287_v42, %v3252_v5 }
 0x15d   : > { %v1289_v13 = vadd.s32 %v1288_v12, %v1284_v10  ;;  %v1487_v56 = vand.u32 2139095040, %v3263_v4  ;;  %v1484_v0 = vand.u32 2147483647, %v3263_v4 }
 0x15f   : > { %v1290_v14 = vadd.s32 536870912, %v1289_v13  ;;  %v1488_v16 = vshrl.u32 %v1487_v56, 23  ;;  %v1491_v60 = vand.u32 8388607, %v1484_v0 }
 0x161   : > { %v3268_v21 = vshrl.u32 %v1290_v14, 30  ;;  %v2426_v23 = vadd.s32 4294967169, %v1488_v16  ;;  %v1492_v1 = vor.u32 8388608, %v1491_v60 }
 0x163   : > { %v1292_v19 = vshll.u32 %v3268_v21, 30  ;;  %v1494_v59 = vadd.s32 1, %v2426_v23  ;;  %v1532_v41 = vshll.u32 %v1492_v1, 8 }
 0x165   : > { %v1293_v25 = vsub.s32 %v1289_v13, %v1292_v19  ;;  %vm1495_vm6 = vcmp.gt.s32.totalorder %v1494_v59, 0 }
 0x166   : > { %v1496_v27 = vsel %vm1495_vm6, %v1494_v59, 0 }
 0x167   : > { %v1295_v28 = vsub.s32 0, %v1293_v25  ;;  %v1498_v31 = vand.u32 31, %v1496_v27  ;;  %v1497_v34 = vshrl.u32 %v1496_v27, 5 }
 0x169   : > { %v2417_v32 = vmin.u32 %v1295_v28, %v1293_v25  ;;  %v1499_v51 = vsub.s32 32, %v1498_v31  ;;  %v1501_v43 = vshll.u32 %v2735_v18, %v1498_v31  ;;  %v1504_v36 = vshll.u32 %v2736_v20, %v1498_v31 }
 0x16a   : > { %v1507_v37 = vshll.u32 %v2737_v22, %v1498_v31  ;;  %v1510_v3 = vshll.u32 %v2738_v24, %v1498_v31  ;;  %v1513_v39 = vshll.u32 %v2739_v26, %v1498_v31  ;;  %vm1516_vm7 = vcmp.lt.s32.totalorder %v1497_v34, 1 }
 0x16b   : > { %v1297_v15 = vclz %v2417_v32  ;;  %v1500_v38 = vshrl.u32 %v2735_v18, %v1499_v51  ;;  %v1502_v44 = vshrl.u32 %v2736_v20, %v1499_v51  ;;  %v1505_v45 = vshrl.u32 %v2737_v22, %v1499_v51 }
 0x16c   : > { %v1508_v29 = vshrl.u32 %v2738_v24, %v1499_v51  ;;  %v1511_v46 = vshrl.u32 %v2739_v26, %v1499_v51  ;;  %v1514_v47 = vshrl.u32 %v2740_v35, %v1499_v51  ;;  %vm1517_vm8 = vcmp.lt.s32.totalorder %v1497_v34, 2 }
 0x16d   : > { %v2418_v63 = vadd.s32 4294967294, %v1297_v15  ;;  %v1503_v48 = vor.u32 %v1502_v44, %v1501_v43  ;;  %v1506_v49 = vor.u32 %v1505_v45, %v1504_v36  ;;  %vm1518_vm10 = vcmp.lt.s32.totalorder %v1497_v34, 3 }
 0x16e   : > { %v1509_v52 = vor.u32 %v1508_v29, %v1507_v37  ;;  %v1512_v54 = vor.u32 %v1511_v46, %v1510_v3  ;;  %v1515_v55 = vor.u32 %v1514_v47, %v1513_v39  ;;  %vm1519_vm11 = vcmp.lt.s32.totalorder %v1497_v34, 4 }
 0x16f   : > { %vm2419_vm9 = vcmp.lt.s32.totalorder %v2418_v63, 0  ;;  %v1520_v62 = vsel %vm1516_vm7, %v1500_v38, %v1503_v48  ;;  %v1524_v6 = vsel %vm1516_vm7, %v1503_v48, %v1506_v49  ;;  %v1315_v36 = vsub.s32 4, %v3268_v21 }
 0x170   : > { %v1300_v40 = vsel %vm2419_vm9, 0, %v2418_v63  ;;  %v1521_v5 = vsel %vm1519_vm11, %v1509_v52, 2102212464  ;;  %v1525_v7 = vsel %vm1519_vm11, %v1512_v54, 920167782  ;;  %v1528_v12 = vsel %vm1516_vm7, %v1506_v49, %v1509_v52 }
 0x171   : > { %v1301_v17 = vsub.s32 32, %v1300_v40  ;;  %v1302_v58 = vshll.u32 %v1293_v25, %v1300_v40  ;;  %v1305_v61 = vsub.s32 4294967266, %v1300_v40  ;;  %v1522_v10 = vsel %vm1518_vm10, %v1506_v49, %v1521_v5 }
 0x172   : > { %v1526_v42 = vsel %vm1518_vm10, %v1509_v52, %v1525_v7  ;;  %v1529_v13 = vsel %vm1519_vm11, %v1515_v55, 1326507024  ;;  %v1523_v23 = vsel %vm1517_vm8, %v1520_v62, %v1522_v10  ;;  %v1444_v10 = vsub.f32 0.0, %v3248_v30 }
 0x173   : > { %v1303_v9 = vshrl.u32 %v1285_v33, %v1301_v17  ;;  %v1306_v50 = vadd.s32 127, %v1305_v61  ;;  %v1527_v11 = vsel %vm1517_vm8, %v1524_v6, %v1526_v42  ;;  %v1530_v16 = vsel %vm1518_vm10, %v1512_v54, %v1529_v13 }
 0x174   : > { %v1531_v19 = vsel %vm1517_vm8, %v1528_v12, %v1530_v16  ;;  %v3294_v59 = vmul.u32.u64.low %v1532_v41, %v1527_v11  ;;  %v3295_v60 = vmul.u32.u64.high %v1532_v41, %v1527_v11, %v3294_v59  ;;  %v1539_v32 = vmul.u32 %v1532_v41, %v1523_v23 }
 0x175   : > { %v1304_v56 = vor.u32 %v1303_v9, %v1302_v58  ;;  %v1307_v14 = vshll.u32 %v1306_v50, 23  ;;  %v3297_v28 = vmul.u32.u64.low %v1532_v41, %v1531_v19  ;;  %v3298_v1 = vmul.u32.u64.high %v1532_v41, %v1531_v19, %v3297_v28 }
 0x176   : > { %v1542_v33 = vadd.s32 1, %v3295_v60  ;;  %v1316_v41 = vsel %vm1231_vm13, %v1315_v36, %v3268_v21  ;;  %v1445_v21 = vmul.f32 2.0, %v3244_v57  ;;  %vm1486_vm7 = vcmp.lt.s32.totalorder %v3263_v4, 0 }
 0x177   : > { %v1308_v25 = vor.u32 4788187, %v1307_v14  ;;  %v1311_v27 = vcvt.s32.f32 %v1304_v56  ;;  %vm1541_vm12 = vc.u32 %v3298_v1, %v3294_v59  ;;  %v1318_v44 = vsel %vm1230_vm14, 0, %v1316_v41 }
 0x178   : > { %v1543_v34 = vsel %vm1541_vm12, %v1542_v33, %v3295_v60  ;;  %v1425_v29 = vadd.s32 3, %v1318_v44  ;;  %v1322_v47 = vand.u32 3, %v1318_v44  ;;  %v1540_v17 = vadd.s32 %v3294_v59, %v3298_v1 }
 0x179   : > { %v1309_v31 = vand.u32 2147483647, %v1308_v25  ;;  %v1544_v43 = vadd.s32 %v1543_v34, %v1539_v32  ;;  %v1446_v13 = vadd.f32 %v1445_v21, %v3248_v30  ;;  %v1448_v1 = vmul.f32 %v3244_v57, %v3244_v57 }
 0x17a   : > { %v1426_v48 = vand.u32 3, %v1425_v29  ;;  %vm1324_vm0 = vcmp.eq.s32.totalorder %v1322_v47, 0  ;;  %vm1327_vm1 = vcmp.eq.s32.totalorder %v1322_v47, 2  ;;  %vm1323_vm5 = vcmp.lt.s32.totalorder %v1322_v47, 2 }
 0x17b   : > { %v1312_v51 = vmul.f32 %v1311_v27, %v1309_v31  ;;  %v1545_v38 = vadd.s32 536870912, %v1544_v43  ;;  %v1447_v28 = vmul.f32 %v1446_v13, %v1444_v10  ;;  %v1457_v34 = vmul.f32 0.025, %v3244_v57 }
 0x17c   : > { %vm1431_vm2 = vcmp.eq.s32.totalorder %v1426_v48, 2  ;;  %vm1428_vm3 = vcmp.eq.s32.totalorder %v1426_v48, 0  ;;  %vm1427_vm6 = vcmp.lt.s32.totalorder %v1426_v48, 2  ;;  %vm3333_vm8 = vcmp.le.f32.partialorder %v1484_v0, 0.7853982 }
 0x17d   : > { %v1313_v15 = vxor.u32 2147483648, %v1312_v51  ;;  %v3308_v39 = vshrl.u32 %v1545_v38, 30  ;;  %v2414_v38 = vld [vmem:[%s2929_s5 + $0x40] sm:$0xff] }
 0x17f   : > { %v1314_v37 = vsel %vm1231_vm13, %v1313_v15, %v1312_v51  ;;  %v1547_v63 = vshll.u32 %v3308_v39, 30  ;;  %v1451_v51 = vmul.f32 0.05, %v3244_v57 }
 0x180   : > { %v1317_v3 = vsel %vm1230_vm14, %v3221_v8, %v1314_v37  ;;  %v1452_v8 = vmul.f32 0.025, %v3248_v30  ;;  %v1458_v37 = vmul.f32 0.05, %v3248_v30 }
 0x181   : > { %2580 = vcosq.f32 %v1317_v3  ;;  %v1548_v45 = vsub.s32 %v1544_v43, %v1547_v63 }
 0x182   : > { %2582 = vsinq.f32 %v1317_v3  ;;  %v2415_v3 = vld [vmem:[%s2929_s5 + $0x48] sm:$0xff]  ;;  %v1453_v63 = vadd.f32 %v1452_v8, %v1451_v51 }
 0x183   : > { %v1550_v2 = vsub.s32 0, %v1548_v45 }
 0x185   : > { %v2427_v46 = vmin.u32 %v1550_v2, %v1548_v45  ;;  %v1570_v2 = vsub.s32 4, %v3308_v39 }
 0x187   : > { %v1552_v49 = vclz %v2427_v46 }
 0x189   : > { %v2428_v52 = vadd.s32 4294967294, %v1552_v49  ;;  %v1459_v49 = vadd.f32 %v1458_v37, %v1457_v34 }
 0x18b   : > { %vm2429_vm4 = vcmp.lt.s32.totalorder %v2428_v52, 0 }
 0x18c   : > { %v1555_v61 = vsel %vm2429_vm4, 0, %v2428_v52 }
 0x18d   : > { %v1556_v6 = vsub.s32 32, %v1555_v61  ;;  %v1557_v7 = vshll.u32 %v1548_v45, %v1555_v61  ;;  %v1560_v42 = vsub.s32 4294967266, %v1555_v61 }
 0x18e   : > { %v2581_v40 = vpop.eup %2580 }
 0x18f   : > { %v2583_v54 = vpop.eup %2582  ;;  %v1328_v55 = vxor.u32 2147483648, %v2581_v40  ;;  %v1558_v56 = vshrl.u32 %v1540_v17, %v1556_v6  ;;  %v1561_v23 = vadd.s32 127, %v1560_v42 }
 0x190   : > { %v1325_v58 = vxor.u32 2147483648, %v2583_v54 }
 0x191   : > { %v1329_v62 = vsel %vm1327_vm1, %v1328_v55, %v2583_v54  ;;  %v1433_v5 = vsel %vm1431_vm2, %v1328_v55, %v2583_v54  ;;  %v1559_v59 = vor.u32 %v1558_v56, %v1557_v7  ;;  %v1562_v60 = vshll.u32 %v1561_v23, 23 }
 0x192   : > { %v1326_v9 = vsel %vm1324_vm0, %v2581_v40, %v1325_v58  ;;  %v1430_v50 = vsel %vm1428_vm3, %v2581_v40, %v1325_v58  ;;  %v1571_v54 = vsel %vm1486_vm7, %v1570_v2, %v3308_v39  ;;  %v1473_v56 = vmul.f32 0.125, %v3244_v57 }
 0x193   : > { %v1330_v11 = vsel %vm1323_vm5, %v1326_v9, %v1329_v62  ;;  %v1434_v12 = vsel %vm1427_vm6, %v1430_v50, %v1433_v5  ;;  %v1563_v31 = vor.u32 4788187, %v1562_v60  ;;  %v1566_v32 = vcvt.s32.f32 %v1559_v59 }
 0x194   : > { %v1331_v14 = vsel %vm1321_vm15, nan, %v1330_v11  ;;  %v1435_v16 = vsel %vm1321_vm15, nan, %v1434_v12  ;;  %v1573_v58 = vsel %vm3333_vm8, 0, %v1571_v54  ;;  %vm1576_vm15 = vweird.f32 %v3263_v4 }
 0x195   : > { %v1436_v19 = vmul.f32 0.048, %v1331_v14  ;;  %v1437_v25 = vmul.f32 0.048, %v1435_v16  ;;  %v1564_v15 = vand.u32 2147483647, %v1563_v31  ;;  %v1474_v8 = vadd.f32 %v1473_v56, %v3217_v53 }
 0x196   : > { %v1680_v61 = vadd.s32 3, %v1573_v58  ;;  %v1577_v10 = vand.u32 3, %v1573_v58 }
 0x197   : > { %v1438_v27 = vmul.f32 %v1436_v19, %v1436_v19  ;;  %v1449_v43 = vmul.f32 %v1447_v28, %v1437_v25  ;;  %v1455_v36 = vmul.f32 %v1448_v1, %v1437_v25  ;;  %v1567_v41 = vmul.f32 %v1566_v32, %v1564_v15 }
 0x198   : > { %v1440_v44 = vadd.f32 0.045, %v1436_v19  ;;  %v1442_v46 = vmul.f32 2.0, %v1436_v19  ;;  %v1681_v39 = vand.u32 3, %v1680_v61  ;;  %vm1582_vm9 = vcmp.eq.s32.totalorder %v1577_v10, 2 }
 0x199   : > { %v1439_v33 = vsub.f32 0.005625, %v1438_v27  ;;  %v1568_v29 = vxor.u32 2147483648, %v1567_v41  ;;  %v1450_v47 = vsub.f32 %v2414_v38, %v1449_v43  ;;  %v1456_v48 = vsub.f32 %v2415_v3, %v1455_v36  ;;  %v2425_v43 = vld [vmem:[%s2929_s5 + $0x58] sm:$0xff] }
 0x19a   : > { %v1441_v21 = vsub.f32 0.0, %v1440_v44  ;;  %v1443_v0 = vadd.f32 0.17, %v1442_v46  ;;  %vm1686_vm10 = vcmp.eq.s32.totalorder %v1681_v39, 2  ;;  %vm1578_vm11 = vcmp.lt.s32.totalorder %v1577_v10, 2 }
 0x19b   : > { %2584 = vrcp.f32 %v1439_v33  ;;  %v1569_v52 = vsel %vm1486_vm7, %v1568_v29, %v1567_v41  ;;  %v1454_v55 = vsub.f32 %v1450_v47, %v1453_v63  ;;  %v1460_v17 = vsub.f32 %v1456_v48, %v1459_v49 }
 0x19c   : > { %v1572_v40 = vsel %vm3333_vm8, %v3263_v4, %v1569_v52  ;;  %vm1579_vm12 = vcmp.eq.s32.totalorder %v1577_v10, 0  ;;  %vm1683_vm13 = vcmp.eq.s32.totalorder %v1681_v39, 0  ;;  %vm1682_vm14 = vcmp.lt.s32.totalorder %v1681_v39, 2 }
 0x19d   : > { %2586 = vcosq.f32 %v1572_v40  ;;  %v1465_v62 = vmul.f32 0.045, %v1454_v55  ;;  %v1466_v5 = vmul.f32 %v1460_v17, %v1441_v21  ;;  %v1469_v6 = vmul.f32 %v1454_v55, %v1441_v21 }
 0x19e   : > { %2588 = vsinq.f32 %v1572_v40  ;;  %v1470_v7 = vmul.f32 %v1460_v17, %v1443_v0  ;;  %v2424_v40 = vld [vmem:[%s2929_s5 + $0x50] sm:$0xff] }
 0x19f   : > { %v1467_v11 = vadd.f32 %v1466_v5, %v1465_v62 }
 0x1a0   : > { %v1471_v12 = vadd.f32 %v1470_v7, %v1469_v6 }
 0x1a8   : > { %v2585_v9 = vpop.eup %2584 }
 0x1a9   : > { %v1462_v50 = vmul.f32 %v2585_v9, %v1439_v33 }
 0x1aa   : > { %v2587_v14 = vpop.eup %2586 }
 0x1ab   : > { %v1463_v42 = vsub.f32 2.0, %v1462_v50  ;;  %v2589_v19 = vpop.eup %2588  ;;  %v1583_v59 = vxor.u32 2147483648, %v2587_v14 }
 0x1ac   : > { %v1580_v27 = vxor.u32 2147483648, %v2589_v19 }
 0x1ad   : > { %v1464_v13 = vmul.f32 %v2585_v9, %v1463_v42  ;;  %v1584_v28 = vsel %vm1582_vm9, %v1583_v59, %v2589_v19  ;;  %v1688_v1 = vsel %vm1686_vm10, %v1583_v59, %v2589_v19 }
 0x1ae   : > { %v1581_v33 = vsel %vm1579_vm12, %v2587_v14, %v1580_v27  ;;  %v1685_v51 = vsel %vm1683_vm13, %v2587_v14, %v1580_v27 }
 0x1af   : > { %v1468_v16 = vmul.f32 %v1467_v11, %v1464_v13  ;;  %v1472_v23 = vmul.f32 %v1471_v12, %v1464_v13  ;;  %v1585_v34 = vsel %vm1578_vm11, %v1581_v33, %v1584_v28  ;;  %v1689_v15 = vsel %vm1682_vm14, %v1685_v51, %v1688_v1 }
 0x1b0   : > { %v1586_v36 = vsel %vm1576_vm15, nan, %v1585_v34  ;;  %v1690_v37 = vsel %vm1576_vm15, nan, %v1689_v15 }
 0x1b1   : > { %v1477_v60 = vmul.f32 0.125, %v1468_v16  ;;  %v1479_v25 = vmul.f32 0.125, %v1472_v23  ;;  %v1692_v41 = vmul.f32 0.048, %v1690_v37 }
 0x1b3   : > { %v3347_v31 = vadd.f32 %v1477_v60, %v3244_v57  ;;  %v3350_v32 = vadd.f32 %v1479_v25, %v3248_v30  ;;  %v1691_v57 = vmul.f32 0.048, %v1586_v36 }
 0x1b5   : > { %v1699_v38 = vsub.f32 0.0, %v3350_v32  ;;  %v1700_v3 = vmul.f32 2.0, %v3347_v31  ;;  %v1703_v30 = vmul.f32 %v3347_v31, %v3347_v31  ;;  %v1706_v63 = vmul.f32 0.05, %v3347_v31 }
 0x1b6   : > { %v1707_v44 = vmul.f32 0.025, %v3350_v32  ;;  %v1712_v45 = vmul.f32 0.025, %v3347_v31  ;;  %v1713_v29 = vmul.f32 0.05, %v3350_v32  ;;  %v1693_v2 = vmul.f32 %v1691_v57, %v1691_v57 }
 0x1b7   : > { %v1701_v53 = vadd.f32 %v1700_v3, %v3350_v32  ;;  %v1695_v46 = vadd.f32 0.045, %v1691_v57  ;;  %v1710_v47 = vmul.f32 %v1703_v30, %v1692_v41  ;;  %v1728_v52 = vmul.f32 0.125, %v3347_v31 }
 0x1b8   : > { %v1714_v49 = vadd.f32 %v1713_v29, %v1712_v45  ;;  %v1694_v21 = vsub.f32 0.005625, %v1693_v2  ;;  %v1708_v55 = vadd.f32 %v1707_v44, %v1706_v63  ;;  %v1730_v58 = vmul.f32 0.125, %v3350_v32 }
 0x1b9   : > { %v1702_v48 = vmul.f32 %v1701_v53, %v1699_v38  ;;  %v1711_v54 = vsub.f32 %v2425_v43, %v1710_v47  ;;  %v3366_v17 = vadd.f32 %v1728_v52, %v1474_v8  ;;  %v1696_v61 = vsub.f32 0.0, %v1695_v46 }
 0x1ba   : > { %2590 = vrcp.f32 %v1694_v21  ;;  %v3370_v6 = vadd.f32 %v1730_v58, %v3263_v4  ;;  %v1697_v7 = vmul.f32 2.0, %v1691_v57 }
 0x1bb   : > { %v1704_v0 = vmul.f32 %v1702_v48, %v1692_v41  ;;  %v1715_v62 = vsub.f32 %v1711_v54, %v1714_v49 }
 0x1bc   : > { %v1742_v10 = vand.u32 2139095040, %v3370_v6  ;;  %v1739_v42 = vand.u32 2147483647, %v3370_v6  ;;  %v1698_v39 = vadd.f32 0.17, %v1697_v7  ;;  %vm1741_vm13 = vcmp.lt.s32.totalorder %v3370_v6, 0 }
 0x1bd   : > { %v1705_v5 = vsub.f32 %v2424_v40, %v1704_v0  ;;  %v1721_v9 = vmul.f32 %v1715_v62, %v1696_v61  ;;  %vm1831_vm15 = vweird.f32 %v3370_v6 }
 0x1be   : > { %v1743_v12 = vshrl.u32 %v1742_v10, 23  ;;  %v1746_v14 = vand.u32 8388607, %v1739_v42  ;;  %v1725_v19 = vmul.f32 %v1715_v62, %v1698_v39  ;;  %vm1740_vm14 = vcmp.le.f32.partialorder %v1739_v42, 0.7853982 }
 0x1bf   : > { %v1709_v50 = vsub.f32 %v1705_v5, %v1708_v55 }
 0x1c0   : > { %v2436_v56 = vadd.s32 4294967169, %v1743_v12  ;;  %v1747_v4 = vor.u32 8388608, %v1746_v14 }
 0x1c1   : > { %v1720_v11 = vmul.f32 0.045, %v1709_v50  ;;  %v1724_v23 = vmul.f32 %v1709_v50, %v1696_v61 }
 0x1c2   : > { %v1749_v16 = vadd.s32 1, %v2436_v56  ;;  %v1787_v37 = vshll.u32 %v1747_v4, 8 }
 0x1c3   : > { %v1722_v13 = vadd.f32 %v1721_v9, %v1720_v11  ;;  %v1726_v28 = vadd.f32 %v1725_v19, %v1724_v23 }
 0x1c4   : > { %vm1750_vm0 = vcmp.gt.s32.totalorder %v1749_v16, 0 }
 0x1c5   : > { %v1751_v59 = vsel %vm1750_vm0, %v1749_v16, 0 }
 0x1c6   : > { %v1753_v25 = vand.u32 31, %v1751_v59  ;;  %v1752_v1 = vshrl.u32 %v1751_v59, 5 }
 0x1c7   : > { %v2591_v60 = vpop.eup %2590 }
 0x1c8   : > { %v1717_v27 = vmul.f32 %v2591_v60, %v1694_v21  ;;  %v1754_v33 = vsub.s32 32, %v1753_v25  ;;  %v1756_v51 = vshll.u32 %v2735_v18, %v1753_v25  ;;  %v1759_v8 = vshll.u32 %v2736_v20, %v1753_v25 }
 0x1c9   : > { %v1762_v34 = vshll.u32 %v2737_v22, %v1753_v25  ;;  %v1765_v43 = vshll.u32 %v2738_v24, %v1753_v25  ;;  %v1768_v36 = vshll.u32 %v2739_v26, %v1753_v25  ;;  %vm1771_vm1 = vcmp.lt.s32.totalorder %v1752_v1, 1 }
 0x1ca   : > { %v1718_v15 = vsub.f32 2.0, %v1717_v27  ;;  %v1755_v38 = vshrl.u32 %v2735_v18, %v1754_v33  ;;  %v1757_v3 = vshrl.u32 %v2736_v20, %v1754_v33  ;;  %v1760_v57 = vshrl.u32 %v2737_v22, %v1754_v33 }
 0x1cb   : > { %v1763_v41 = vshrl.u32 %v2738_v24, %v1754_v33  ;;  %v1766_v63 = vshrl.u32 %v2739_v26, %v1754_v33  ;;  %v1769_v53 = vshrl.u32 %v2740_v35, %v1754_v33  ;;  %vm1773_vm2 = vcmp.lt.s32.totalorder %v1752_v1, 3 }
 0x1cc   : > { %v1719_v30 = vmul.f32 %v2591_v60, %v1718_v15  ;;  %v1758_v44 = vor.u32 %v1757_v3, %v1756_v51  ;;  %v1761_v45 = vor.u32 %v1760_v57, %v1759_v8  ;;  %vm1772_vm3 = vcmp.lt.s32.totalorder %v1752_v1, 2 }
 0x1cd   : > { %v1764_v29 = vor.u32 %v1763_v41, %v1762_v34  ;;  %v1767_v47 = vor.u32 %v1766_v63, %v1765_v43  ;;  %v1770_v48 = vor.u32 %v1769_v53, %v1768_v36  ;;  %vm1774_vm4 = vcmp.lt.s32.totalorder %v1752_v1, 4 }
 0x1ce   : > { %v1723_v2 = vmul.f32 %v1722_v13, %v1719_v30  ;;  %v1727_v46 = vmul.f32 %v1726_v28, %v1719_v30  ;;  %v1775_v49 = vsel %vm1771_vm1, %v1755_v38, %v1758_v44  ;;  %v1779_v52 = vsel %vm1771_vm1, %v1758_v44, %v1761_v45 }
 0x1cf   : > { %v1776_v54 = vsel %vm1774_vm4, %v1764_v29, 2102212464  ;;  %v1780_v0 = vsel %vm1774_vm4, %v1767_v47, 920167782  ;;  %v1783_v61 = vsel %vm1771_vm1, %v1761_v45, %v1764_v29  ;;  %v1784_v62 = vsel %vm1774_vm4, %v1770_v48, 1326507024 }
 0x1d0   : > { %v1732_v40 = vmul.f32 0.125, %v1723_v2  ;;  %v1734_v21 = vmul.f32 0.125, %v1727_v46  ;;  %v1777_v55 = vsel %vm1773_vm2, %v1761_v45, %v1776_v54  ;;  %v1781_v58 = vsel %vm1773_vm2, %v1764_v29, %v1780_v0 }
 0x1d1   : > { %v1782_v7 = vsel %vm1772_vm3, %v1779_v52, %v1781_v58  ;;  %v1785_v50 = vsel %vm1773_vm2, %v1767_v47, %v1784_v62  ;;  %v1778_v12 = vsel %vm1772_vm3, %v1775_v49, %v1777_v55 }
 0x1d2   : > { %v3393_v5 = vadd.f32 %v1732_v40, %v3347_v31  ;;  %v3397_v9 = vadd.f32 %v1734_v21, %v3350_v32  ;;  %v3400_v10 = vmul.u32.u64.low %v1787_v37, %v1782_v7  ;;  %v3401_v11 = vmul.u32.u64.high %v1787_v37, %v1782_v7, %v3400_v10 }
 0x1d3   : > { %v1786_v39 = vsel %vm1772_vm3, %v1783_v61, %v1785_v50  ;;  %v1794_v14 = vmul.u32 %v1787_v37, %v1778_v12 }
 0x1d4   : > { %v3405_v13 = vmul.u32.u64.low %v1787_v37, %v1786_v39  ;;  %v3406_v56 = vmul.u32.u64.high %v1787_v37, %v1786_v39, %v3405_v13  ;;  %v1983_v31 = vmul.f32 0.125, %v3393_v5  ;;  %v1797_v16 = vadd.s32 1, %v3401_v11 }
 0x1d5   : > { %v1985_v32 = vmul.f32 0.125, %v3397_v9 }
 0x1d6   : > { %v3412_v23 = vadd.f32 %v1983_v31, %v3366_v17  ;;  %vm1796_vm5 = vc.u32 %v3406_v56, %v3400_v10  ;;  %v1795_v3 = vadd.s32 %v3400_v10, %v3406_v56 }
 0x1d7   : > { %v3416_v19 = vadd.f32 %v1985_v32, %v3370_v6  ;;  %v1798_v4 = vsel %vm1796_vm5, %v1797_v16, %v3401_v11 }
 0x1d8   : > { %v1799_v59 = vadd.s32 %v1798_v4, %v1794_v14 }
 0x1d9   : > { %v1997_v60 = vand.u32 2139095040, %v3416_v19  ;;  %v1994_v28 = vand.u32 2147483647, %v3416_v19 }
 0x1da   : > { %v1800_v25 = vadd.s32 536870912, %v1799_v59 }
 0x1db   : > { %v1998_v27 = vshrl.u32 %v1997_v60, 23  ;;  %v2001_v8 = vand.u32 8388607, %v1994_v28 }
 0x1dc   : > { %v3421_v1 = vshrl.u32 %v1800_v25, 30 }
 0x1dd   : > { %v2446_v33 = vadd.s32 4294967169, %v1998_v27  ;;  %v2002_v36 = vor.u32 8388608, %v2001_v8 }
 0x1de   : > { %v1802_v17 = vshll.u32 %v3421_v1, 30 }
 0x1df   : > { %v2004_v51 = vadd.s32 1, %v2446_v33  ;;  %v2042_v46 = vshll.u32 %v2002_v36, 8 }
 0x1e0   : > { %v1803_v34 = vsub.s32 %v1799_v59, %v1802_v17 }
 0x1e1   : > { %vm2005_vm6 = vcmp.gt.s32.totalorder %v2004_v51, 0 }
 0x1e2   : > { %v2006_v15 = vsel %vm2005_vm6, %v2004_v51, 0  ;;  %v1805_v43 = vsub.s32 0, %v1803_v34 }
 0x1e3   : > { %v2008_v37 = vand.u32 31, %v2006_v15  ;;  %v2007_v57 = vshrl.u32 %v2006_v15, 5 }
 0x1e4   : > { %v2437_v38 = vmin.u32 %v1805_v43, %v1803_v34 }
 0x1e5   : > { %v2009_v41 = vsub.s32 32, %v2008_v37  ;;  %v2011_v63 = vshll.u32 %v2735_v18, %v2008_v37  ;;  %v2014_v53 = vshll.u32 %v2736_v20, %v2008_v37  ;;  %v2017_v44 = vshll.u32 %v2737_v22, %v2008_v37 }
 0x1e6   : > { %v1807_v30 = vclz %v2437_v38  ;;  %v2020_v29 = vshll.u32 %v2738_v24, %v2008_v37  ;;  %v2023_v2 = vshll.u32 %v2739_v26, %v2008_v37  ;;  %vm2026_vm7 = vcmp.lt.s32.totalorder %v2007_v57, 1 }
 0x1e7   : > { %v2010_v45 = vshrl.u32 %v2735_v18, %v2009_v41  ;;  %v2012_v48 = vshrl.u32 %v2736_v20, %v2009_v41  ;;  %v2015_v49 = vshrl.u32 %v2737_v22, %v2009_v41  ;;  %v2018_v52 = vshrl.u32 %v2738_v24, %v2009_v41 }
 0x1e8   : > { %v2438_v47 = vadd.s32 4294967294, %v1807_v30  ;;  %v2021_v40 = vshrl.u32 %v2739_v26, %v2009_v41  ;;  %v2024_v21 = vshrl.u32 %v2740_v35, %v2009_v41  ;;  %vm2027_vm8 = vcmp.lt.s32.totalorder %v2007_v57, 2 }
 0x1e9   : > { %v2013_v18 = vor.u32 %v2012_v48, %v2011_v63  ;;  %v2016_v54 = vor.u32 %v2015_v49, %v2014_v53  ;;  %v2019_v0 = vor.u32 %v2018_v52, %v2017_v44  ;;  %vm2028_vm10 = vcmp.lt.s32.totalorder %v2007_v57, 3 }
 0x1ea   : > { %vm2439_vm9 = vcmp.lt.s32.totalorder %v2438_v47, 0  ;;  %v2022_v58 = vor.u32 %v2021_v40, %v2020_v29  ;;  %v2025_v61 = vor.u32 %v2024_v21, %v2023_v2  ;;  %vm2029_vm11 = vcmp.lt.s32.totalorder %v2007_v57, 4 }
 0x1eb   : > { %v1810_v55 = vsel %vm2439_vm9, 0, %v2438_v47  ;;  %v2030_v22 = vsel %vm2026_vm7, %v2010_v45, %v2013_v18  ;;  %v2031_v24 = vsel %vm2029_vm11, %v2019_v0, 2102212464  ;;  %v2034_v26 = vsel %vm2026_vm7, %v2013_v18, %v2016_v54 }
 0x1ec   : > { %v1811_v62 = vsub.s32 32, %v1810_v55  ;;  %v1812_v20 = vshll.u32 %v1803_v34, %v1810_v55  ;;  %v1815_v7 = vsub.s32 4294967266, %v1810_v55  ;;  %v2035_v35 = vsel %vm2029_vm11, %v2022_v58, 920167782 }
 0x1ed   : > { %v2032_v11 = vsel %vm2028_vm10, %v2016_v54, %v2031_v24  ;;  %v2036_v12 = vsel %vm2028_vm10, %v2019_v0, %v2035_v35  ;;  %v2038_v13 = vsel %vm2026_vm7, %v2016_v54, %v2019_v0  ;;  %v2039_v56 = vsel %vm2029_vm11, %v2025_v61, 1326507024 }
 0x1ee   : > { %v1813_v50 = vshrl.u32 %v1795_v3, %v1811_v62  ;;  %v1816_v10 = vadd.s32 127, %v1815_v7  ;;  %v2037_v39 = vsel %vm2027_vm8, %v2034_v26, %v2036_v12  ;;  %v2040_v16 = vsel %vm2028_vm10, %v2022_v58, %v2039_v56 }
 0x1ef   : > { %v2033_v32 = vsel %vm2027_vm8, %v2030_v22, %v2032_v11  ;;  %v2041_v4 = vsel %vm2027_vm8, %v2038_v13, %v2040_v16  ;;  %v3447_v59 = vmul.u32.u64.low %v2042_v46, %v2037_v39  ;;  %v3448_v60 = vmul.u32.u64.high %v2042_v46, %v2037_v39, %v3447_v59 }
 0x1f0   : > { %v1814_v31 = vor.u32 %v1813_v50, %v1812_v20  ;;  %v1817_v14 = vshll.u32 %v1816_v10, 23  ;;  %v3450_v33 = vmul.u32.u64.low %v2042_v46, %v2041_v4  ;;  %v3451_v17 = vmul.u32.u64.high %v2042_v46, %v2041_v4, %v3450_v33 }
 0x1f1   : > { %v2049_v8 = vmul.u32 %v2042_v46, %v2033_v32  ;;  %v2052_v34 = vadd.s32 1, %v3448_v60  ;;  %v1825_v38 = vsub.s32 4, %v3421_v1  ;;  %v1954_v22 = vsub.f32 0.0, %v3397_v9 }
 0x1f2   : > { %v1818_v25 = vor.u32 4788187, %v1817_v14  ;;  %v1821_v27 = vcvt.s32.f32 %v1814_v31  ;;  %vm2051_vm12 = vc.u32 %v3451_v17, %v3447_v59  ;;  %v2050_v18 = vadd.s32 %v3447_v59, %v3451_v17 }
 0x1f3   : > { %v2053_v43 = vsel %vm2051_vm12, %v2052_v34, %v3448_v60  ;;  %v1826_v63 = vsel %vm1741_vm13, %v1825_v38, %v3421_v1  ;;  %v1955_v1 = vmul.f32 2.0, %v3393_v5  ;;  %v1958_v4 = vmul.f32 %v3393_v5, %v3393_v5 }
 0x1f4   : > { %v1819_v51 = vand.u32 2147483647, %v1818_v25  ;;  %v2054_v37 = vadd.s32 %v2053_v43, %v2049_v8  ;;  %v1828_v44 = vsel %vm1740_vm14, 0, %v1826_v63  ;;  %v1967_v33 = vmul.f32 0.025, %v3393_v5  ;;  %v2435_v43 = vld [vmem:[%s2929_s5 + $0x68] sm:$0xff] }
 0x1f5   : > { %v1935_v29 = vadd.s32 3, %v1828_v44  ;;  %v1832_v46 = vand.u32 3, %v1828_v44  ;;  %v1956_v50 = vadd.f32 %v1955_v1, %v3397_v9  ;;  %v1968_v34 = vmul.f32 0.05, %v3397_v9 }
 0x1f6   : > { %v1822_v15 = vmul.f32 %v1821_v27, %v1819_v51  ;;  %v2055_v57 = vadd.s32 536870912, %v2054_v37  ;;  %v1961_v27 = vmul.f32 0.05, %v3393_v5  ;;  %vm1996_vm7 = vcmp.lt.s32.totalorder %v3416_v19, 0 }
 0x1f7   : > { %v1936_v47 = vand.u32 3, %v1935_v29  ;;  %vm1834_vm0 = vcmp.eq.s32.totalorder %v1832_v46, 0  ;;  %vm1837_vm1 = vcmp.eq.s32.totalorder %v1832_v46, 2  ;;  %vm1833_vm5 = vcmp.lt.s32.totalorder %v1832_v46, 2 }
 0x1f8   : > { %v1823_v36 = vxor.u32 2147483648, %v1822_v15  ;;  %v3461_v30 = vshrl.u32 %v2055_v57, 30  ;;  %v1957_v32 = vmul.f32 %v1956_v50, %v1954_v22  ;;  %vm3486_vm8 = vcmp.le.f32.partialorder %v1994_v28, 0.7853982 }
 0x1f9   : > { %vm1941_vm2 = vcmp.eq.s32.totalorder %v1936_v47, 2  ;;  %vm1938_vm3 = vcmp.eq.s32.totalorder %v1936_v47, 0  ;;  %vm1937_vm6 = vcmp.lt.s32.totalorder %v1936_v47, 2 }
 0x1fa   : > { %v1824_v3 = vsel %vm1741_vm13, %v1823_v36, %v1822_v15  ;;  %v2057_v53 = vshll.u32 %v3461_v30, 30  ;;  %v2434_v15 = vld [vmem:[%s2929_s5 + $0x60] sm:$0xff] }
 0x1fb   : > { %v1827_v41 = vsel %vm1740_vm14, %v3370_v6, %v1824_v3  ;;  %v1962_v6 = vmul.f32 0.025, %v3397_v9 }
 0x1fc   : > { %2592 = vcosq.f32 %v1827_v41  ;;  %v2058_v45 = vsub.s32 %v2054_v37, %v2057_v53 }
 0x1fd   : > { %2594 = vsinq.f32 %v1827_v41  ;;  %v1963_v37 = vadd.f32 %v1962_v6, %v1961_v27  ;;  %v2080_v41 = vsub.s32 4, %v3461_v30 }
 0x1fe   : > { %v2060_v42 = vsub.s32 0, %v2058_v45 }
 0x1ff   : > { %v2081_v46 = vsel %vm1996_vm7, %v2080_v41, %v3461_v30  ;;  %v2444_v41 = vld [vmem:[%s2929_s5 + $0x70] sm:$0xff] }
 0x200   : > { %v2447_v2 = vmin.u32 %v2060_v42, %v2058_v45 }
 0x202   : > { %v2062_v48 = vclz %v2447_v2 }
 0x204   : > { %v2448_v49 = vadd.s32 4294967294, %v2062_v48 }
 0x206   : > { %vm2449_vm4 = vcmp.lt.s32.totalorder %v2448_v49, 0 }
 0x207   : > { %v2065_v0 = vsel %vm2449_vm4, 0, %v2448_v49  ;;  %v2083_v49 = vsel %vm3486_vm8, 0, %v2081_v46 }
 0x208   : > { %v2066_v61 = vsub.s32 32, %v2065_v0  ;;  %v2067_v62 = vshll.u32 %v2058_v45, %v2065_v0  ;;  %v2070_v24 = vsub.s32 4294967266, %v2065_v0  ;;  %v1969_v45 = vadd.f32 %v1968_v34, %v1967_v33 }
 0x209   : > { %v2593_v52 = vpop.eup %2592 }
 0x20a   : > { %v2595_v40 = vpop.eup %2594  ;;  %v1838_v21 = vxor.u32 2147483648, %v2593_v52  ;;  %v2068_v10 = vshrl.u32 %v2050_v18, %v2066_v61  ;;  %v2071_v39 = vadd.s32 127, %v2070_v24 }
 0x20b   : > { %v1835_v54 = vxor.u32 2147483648, %v2595_v40 }
 0x20c   : > { %v1839_v55 = vsel %vm1837_vm1, %v1838_v21, %v2595_v40  ;;  %v1943_v58 = vsel %vm1941_vm2, %v1838_v21, %v2595_v40  ;;  %v2069_v56 = vor.u32 %v2068_v10, %v2067_v62  ;;  %v2072_v31 = vshll.u32 %v2071_v39, 23 }
 0x20d   : > { %v1836_v20 = vsel %vm1834_vm0, %v2593_v52, %v1835_v54  ;;  %v1940_v7 = vsel %vm1938_vm3, %v2593_v52, %v1835_v54  ;;  %v2190_v52 = vadd.s32 3, %v2083_v49 }
 0x20e   : > { %v1840_v26 = vsel %vm1833_vm5, %v1836_v20, %v1839_v55  ;;  %v1944_v35 = vsel %vm1937_vm6, %v1940_v7, %v1943_v58  ;;  %v2073_v59 = vor.u32 4788187, %v2072_v31  ;;  %v2076_v60 = vcvt.s32.f32 %v2069_v56 }
 0x20f   : > { %v1841_v11 = vsel %vm1831_vm15, nan, %v1840_v26  ;;  %v1945_v12 = vsel %vm1831_vm15, nan, %v1944_v35  ;;  %v2087_v55 = vand.u32 3, %v2083_v49  ;;  %v2191_v30 = vand.u32 3, %v2190_v52 }
 0x210   : > { %v1946_v13 = vmul.f32 0.048, %v1841_v11  ;;  %v1947_v14 = vmul.f32 0.048, %v1945_v12  ;;  %v2074_v17 = vand.u32 2147483647, %v2073_v59  ;;  %vm2086_vm15 = vweird.f32 %v3416_v19 }
 0x211   : > { %vm2092_vm9 = vcmp.eq.s32.totalorder %v2087_v55, 2  ;;  %vm2196_vm10 = vcmp.eq.s32.totalorder %v2191_v30, 2  ;;  %vm2088_vm11 = vcmp.lt.s32.totalorder %v2087_v55, 2  ;;  %vm2089_vm12 = vcmp.eq.s32.totalorder %v2087_v55, 0 }
 0x212   : > { %v1948_v16 = vmul.f32 %v1946_v13, %v1946_v13  ;;  %v1959_v51 = vmul.f32 %v1957_v32, %v1947_v14  ;;  %v1965_v8 = vmul.f32 %v1958_v4, %v1947_v14  ;;  %v2077_v36 = vmul.f32 %v2076_v60, %v2074_v17 }
 0x213   : > { %v1950_v38 = vadd.f32 0.045, %v1946_v13  ;;  %v1952_v63 = vmul.f32 2.0, %v1946_v13  ;;  %vm2193_vm13 = vcmp.eq.s32.totalorder %v2191_v30, 0  ;;  %vm2192_vm14 = vcmp.lt.s32.totalorder %v2191_v30, 2 }
 0x214   : > { %v1949_v25 = vsub.f32 0.005625, %v1948_v16  ;;  %v2078_v57 = vxor.u32 2147483648, %v2077_v36  ;;  %v1960_v53 = vsub.f32 %v2434_v15, %v1959_v51  ;;  %v1966_v44 = vsub.f32 %v2435_v43, %v1965_v8 }
 0x215   : > { %v1951_v2 = vsub.f32 0.0, %v1950_v38  ;;  %v1953_v28 = vadd.f32 0.17, %v1952_v63  ;;  %v2445_v63 = vld [vmem:[%s2929_s5 + $0x78] sm:$0xff] }
 0x216   : > { %2596 = vrcp.f32 %v1949_v25  ;;  %v2079_v29 = vsel %vm1996_vm7, %v2078_v57, %v2077_v36  ;;  %v1964_v47 = vsub.f32 %v1960_v53, %v1963_v37  ;;  %v1970_v48 = vsub.f32 %v1966_v44, %v1969_v45 }
 0x217   : > { %v2082_v42 = vsel %vm3486_vm8, %v3416_v19, %v2079_v29 }
 0x218   : > { %2598 = vcosq.f32 %v2082_v42  ;;  %v1975_v1 = vmul.f32 0.045, %v1964_v47  ;;  %v1976_v40 = vmul.f32 %v1970_v48, %v1951_v2  ;;  %v1979_v21 = vmul.f32 %v1964_v47, %v1951_v2 }
 0x219   : > { %2600 = vsinq.f32 %v2082_v42  ;;  %v1980_v18 = vmul.f32 %v1970_v48, %v1953_v28 }
 0x21a   : > { %v1977_v61 = vadd.f32 %v1976_v40, %v1975_v1 }
 0x21b   : > { %v1981_v62 = vadd.f32 %v1980_v18, %v1979_v21 }
 0x223   : > { %v2597_v54 = vpop.eup %2596 }
 0x224   : > { %v1972_v0 = vmul.f32 %v2597_v54, %v1949_v25 }
 0x225   : > { %v2599_v7 = vpop.eup %2598 }
 0x226   : > { %v1973_v58 = vsub.f32 2.0, %v1972_v0  ;;  %v2601_v26 = vpop.eup %2600  ;;  %v2093_v35 = vxor.u32 2147483648, %v2599_v7 }
 0x227   : > { %v2090_v11 = vxor.u32 2147483648, %v2601_v26 }
 0x228   : > { %v1974_v20 = vmul.f32 %v2597_v54, %v1973_v58  ;;  %v2094_v12 = vsel %vm2092_vm9, %v2093_v35, %v2601_v26  ;;  %v2198_v39 = vsel %vm2196_vm10, %v2093_v35, %v2601_v26 }
 0x229   : > { %v2091_v31 = vsel %vm2089_vm12, %v2599_v7, %v2090_v11  ;;  %v2195_v14 = vsel %vm2193_vm13, %v2599_v7, %v2090_v11 }
 0x22a   : > { %v1978_v22 = vmul.f32 %v1977_v61, %v1974_v20  ;;  %v1982_v24 = vmul.f32 %v1981_v62, %v1974_v20  ;;  %v2095_v16 = vsel %vm2088_vm11, %v2091_v31, %v2094_v12  ;;  %v2199_v32 = vsel %vm2192_vm14, %v2195_v14, %v2198_v39 }
 0x22b   : > { %v2096_v4 = vsel %vm2086_vm15, nan, %v2095_v16  ;;  %v2200_v59 = vsel %vm2086_vm15, nan, %v2199_v32 }
 0x22c   : > { %v1987_v50 = vmul.f32 0.125, %v1978_v22  ;;  %v1989_v10 = vmul.f32 0.125, %v1982_v24  ;;  %v2201_v27 = vmul.f32 0.048, %v2096_v4  ;;  %v2202_v33 = vmul.f32 0.048, %v2200_v59 }
 0x22e   : > { %v1988_v13 = vadd.f32 %v1987_v50, %v3393_v5  ;;  %v1990_v56 = vadd.f32 %v1989_v10, %v3397_v9  ;;  %v2203_v17 = vmul.f32 %v2201_v27, %v2201_v27  ;;  %v2205_v44 = vadd.f32 0.045, %v2201_v27 }
 0x22f   : > { %v2207_v45 = vmul.f32 2.0, %v2201_v27 }
 0x230   : > { %v2209_v60 = vsub.f32 0.0, %v1990_v56  ;;  %v2210_v25 = vmul.f32 2.0, %v1988_v13  ;;  %v2213_v51 = vmul.f32 %v1988_v13, %v1988_v13  ;;  %v2238_v5 = vmul.f32 0.125, %v1988_v13 }
 0x231   : > { %v2204_v34 = vsub.f32 0.005625, %v2203_v17  ;;  %v2216_v9 = vmul.f32 0.05, %v1988_v13  ;;  %v2217_v15 = vmul.f32 0.025, %v1990_v56 }
 0x232   : > { %v2211_v6 = vadd.f32 %v2210_v25, %v1990_v56  ;;  %v2222_v43 = vmul.f32 0.025, %v1988_v13  ;;  %v2239_v36 = vadd.f32 %v2238_v5, %v3412_v23  ;;  %v2240_v37 = vmul.f32 0.125, %v1990_v56 }
 0x233   : > { %v2220_v3 = vmul.f32 %v2213_v51, %v2202_v33  ;;  %v2223_v57 = vmul.f32 0.05, %v1990_v56  ;;  %2602 = vrcp.f32 %v2204_v34  ;;  %v2218_v23 = vadd.f32 %v2217_v15, %v2216_v9 }
 0x234   : > { %v2212_v8 = vmul.f32 %v2211_v6, %v2209_v60  ;;  %v2241_v53 = vadd.f32 %v2240_v37, %v3416_v19  ;;  %2246 = vst [vmem:[%s3506_s20] sm:$0xff] %v2239_v36  ;;  %v2206_v46 = vsub.f32 0.0, %v2205_v44  ;;  %v2208_v28 = vadd.f32 0.17, %v2207_v45 }
 0x235   : > { %v2221_v42 = vsub.f32 %v2445_v63, %v2220_v3  ;;  %v2224_v2 = vadd.f32 %v2223_v57, %v2222_v43 }
 0x236   : > { %v2214_v38 = vmul.f32 %v2212_v8, %v2202_v33  ;;  %2454 = vst [vmem:[%s3506_s20 + $0x8] sm:$0xff] %v2241_v53 }
 0x237   : > { %v2225_v48 = vsub.f32 %v2221_v42, %v2224_v2 }
 0x238   : > { %v2215_v29 = vsub.f32 %v2444_v41, %v2214_v38 }
 0x239   : > { %v2231_v49 = vmul.f32 %v2225_v48, %v2206_v46  ;;  %v2235_v1 = vmul.f32 %v2225_v48, %v2208_v28 }
 0x23a   : > { %v2219_v47 = vsub.f32 %v2215_v29, %v2218_v23 }
 0x23c   : > { %v2230_v19 = vmul.f32 0.045, %v2219_v47  ;;  %v2234_v52 = vmul.f32 %v2219_v47, %v2206_v46 }
 0x23e   : > { %v2232_v54 = vadd.f32 %v2231_v49, %v2230_v19  ;;  %v2236_v0 = vadd.f32 %v2235_v1, %v2234_v52 }
 0x240   : > { %v2603_v40 = vpop.eup %2602 }
 0x241   : > { %v2227_v21 = vmul.f32 %v2603_v40, %v2204_v34 }
 0x243   : > { %v2228_v18 = vsub.f32 2.0, %v2227_v21 }
 0x245   : > { %v2229_v55 = vmul.f32 %v2603_v40, %v2228_v18 }
 0x247   : > { %v2233_v58 = vmul.f32 %v2232_v54, %v2229_v55  ;;  %v2237_v61 = vmul.f32 %v2236_v0, %v2229_v55 }
 0x249   : > { %v2242_v62 = vmul.f32 0.125, %v2233_v58  ;;  %v2244_v30 = vmul.f32 0.125, %v2237_v61 }
 0x24b   : > { %v2243_v20 = vadd.f32 %v2242_v62, %v1988_v13  ;;  %v2245_v7 = vadd.f32 %v2244_v30, %v1990_v56 }
 0x24d   : > { %2455 = vst [vmem:[%s3506_s20 + $0x10] sm:$0xff] %v2243_v20  ;;  %2456 = vst [vmem:[%s3506_s20 + $0x18] sm:$0xff] %v2245_v7 }
 0x24e   : > { %2673 = shalt.err (!%p2670_p5)
}
 0x24f   : > { %s2674_s8 = scalar_lea.hbm %s3515_s25, 512  ;;  %s2678_s4 = scalar_lea.hbm %s3564_s2, 1024 }
 0x250   : > { %p2675_p9 = scmp.ne.s32.totalorder %s3515_s25, %s2674_s8  ;;  %p2679_p4 = scmp.lt.s32.totalorder %s3515_s25, %s3564_s2 }
 0x251   : > { %p2680_p8 = scmp.lt.s32.totalorder %s2678_s4, %s2674_s8 }
 0x252   : > { %p2676_p11 = pnand %p2675_p9, %p3585_p2 }
 0x253   : > { %p2681_p6 = por %p2680_p8, %p2679_p4 }
 0x254   : > { %p2677_p0 = pneg %p2676_p11 }
 0x256   : > { %p2682_p13 = pnand %p2681_p6, %p2677_p0 }
 0x258   : > { %2685 = shalt.err (!%p2682_p13)
}
 0x259   : > { %s2742_s29 = smov 128   ;;  %s2743_s5 = smov 256  }
 0x25a   : > { %s2744_s20 = smov 8  }
 0x25b   : > { %2497 = dma.vmem_to_hbm [thread:$0]  (%p3585_p2), %s3517_s16, 512, %s3515_s25, %s2254_s13, %s2742_s29, %s2743_s5, %s2744_s20  }
 0x25c PF: > { %s2281_s14 = sand.u32 1, %s2716_s9   ;;  %p3586_p12 = scmp.ne.s32.totalorder %s3570_s22, 0 }
 0x25d   : > { %p3587_p7 = scmp.ge.s32.totalorder %s2728_s12, 2  ;;  %s2282_s19 = scalar_lea.sflag [#allocation4], %s2281_s14 }
 0x25f   : > { %p2507_p10 = pnand %p3587_p7, %p3586_p12 }
 0x261   : > { %p2508_p1 = pneg %p2507_p10 }
 0x263   : > { %2711 = dma.done.wait (%p2508_p1), %s2282_s19, 512  }
 0x264   : > { %2713 = vsyncadd (%p2508_p1), %s2282_s19, 4294966784  ;;  %p18_p3 = scmp.ge.s32.totalorder %s2785_s15, 4   ;;  %s3588_s9 = smov %s2720_s10 }
 0x265   : > { %s3589_s10 = smov %s2724_s11  ;;  %s3590_s11 = smov %s2797_s18 }
 0x266   : > { %s3591_s12 = smov %s2785_s15  ;;  %20 = sbr.rel (!%p18_p3) target bundleno = 7 (0x7), region = 99 }
 0x26b   :  { %2287 = vsyncpa [#allocation3], 1 }
 0x26c   :  { %2289 = vsyncpa [#allocation3 + $0x1], 1 }
 0x26d   :  { %2290 = vsyncpa [#allocation6], 1 }
 0x26e   :  { %2292 = vsyncpa [#allocation6 + $0x1], 1 }
 0x26f   :  { %2293 = vsyncpa [#allocation4], 1 }
 0x270   :  { %2295 = vsyncpa [#allocation4 + $0x1], 1 }

</bundles_post_ra>
